<compile_context>
chip_gen: v5e
topology: v5e:2x2
jax: 0.10.0
libtpu: 0.0.40
codegen_flags: <defaults>
</compile_context>

<pallas_src>
import functools

import jax
import jax.numpy as jnp
from jax.experimental import pallas as pl
from jax.experimental.pallas import tpu as pltpu


def _cdiv(a, b):
    return -(-a // b)


def _conv_bn_relu_kernel(x_ref, w_ref, shift_ref, o_ref, *scratch, kh, kw,
                         stride, dilation, tile_h, wo, relu, fuse_taps):
    """One (batch, H-tile) grid step: in-kernel im2col + MXU matmul(s).

    x_ref:     (1, Hp, Wp, Cin)              bf16  full padded image (1 batch elt)
    w_ref:     fused:     (kh*kw*Cin, Cout_pad) bf16  BN-scale-folded weight
               unfused:   (kh*kw, Cin, Cout_pad)
    shift_ref: (1, Cout_pad)                 f32   folded BN shift (+ conv bias)
    o_ref:     (1, tile_h, Wo, Cout_pad)           NHWC output tile (lane-dense)
    scratch:   unfused only: (tile_h*Wo, Cout_pad) f32 accumulator
    """
    cin = x_ref.shape[-1]
    cout_p = o_ref.shape[-1]
    t = pl.program_id(1)
    h0 = pl.multiple_of(t * (tile_h * stride), tile_h * stride)

    rows_span = (tile_h - 1) * stride + 1
    cols_span = (wo - 1) * stride + 1

    def window(idx):
        i, j = idx // kw, idx % kw
        win = x_ref[0,
                    pl.ds(h0 + i * dilation, rows_span),
                    pl.ds(j * dilation, cols_span), :]
        if stride > 1:                       # python-level branch (not traced here)
            win = win[::stride, ::stride, :]
        return win                           # (tile_h, wo, cin) bf16

    if fuse_taps:
        # Stack the kh*kw taps along the contraction dim -> one MXU pass.
        patch = jnp.concatenate([window(idx) for idx in range(kh * kw)],
                                axis=-1)                  # (tile_h, wo, kh*kw*cin)
        patch = patch.reshape(tile_h * wo, kh * kw * cin)
        y = jnp.dot(patch, w_ref[...], preferred_element_type=jnp.float32)
    else:
        acc_ref = scratch[0]
        for idx in range(kh * kw):
            patch = window(idx).reshape(tile_h * wo, cin)
            contrib = jnp.dot(patch, w_ref[idx],
                              preferred_element_type=jnp.float32)
            if idx == 0:
                acc_ref[...] = contrib
            else:
                acc_ref[...] += contrib
        y = acc_ref[...]

    y = y + shift_ref[...]                   # f32 epilogue
    if relu:
        y = jnp.maximum(y, 0.0)
    o_ref[0] = y.reshape(tile_h, wo, cout_p).astype(o_ref.dtype)


def conv_bn_relu2d(x, weight, bias, bn_gamma, bn_beta, running_mean,
                   running_var, *, stride=1, padding=0, dilation=1,
                   relu=False, eps=1e-5, target_rows=512,
                   vmem_budget_bytes=20 * 1024 * 1024):
    """Pallas TPU implementation of CConvBNReLU2d.forward (float eval path)."""
    n, cin, h, w = x.shape
    cout, _, kh, kw = weight.shape

    hp = h + 2 * padding
    wp = w + 2 * padding
    ho = (hp - dilation * (kh - 1) - 1) // stride + 1
    wo = (wp - dilation * (kw - 1) - 1) // stride + 1
    cout_p = _cdiv(cout, 128) * 128          # lane-dense output channel dim

    # Stack all kernel taps into one MXU contraction when the folded K is small.
    fuse_taps = (kh * kw * cin) <= 512

    # ---- choose tile_h (output rows per grid step) ----
    tile_h = max(1, min(ho, _cdiv(target_rows, max(wo, 1))))
    # keep at least 2 total grid steps so megacore / both v7x TCs get work
    while n * _cdiv(ho, tile_h) < 2 and tile_h > 1:
        tile_h = _cdiv(tile_h, 2)

    def _block_bytes(th):
        ho_pad_ = _cdiv(ho, th) * th
        hp2_ = (ho_pad_ - 1) * stride + dilation * (kh - 1) + 1
        x_blk = max(hp, hp2_) * wp * cin * 2       # bf16 image block
        o_blk = th * wo * cout_p * 4               # f32 output block
        w_blk = kh * kw * cin * cout_p * 2
        s_blk = cout_p * 4
        work = th * wo * (cout_p * 4 + kh * kw * cin * 2)   # acc / fused patch
        return 2 * (x_blk + o_blk + w_blk + s_blk) + work    # double-buffered

    # Shrink the output tile until the working set fits a conservative VMEM
    # budget (safe on v7x's 64 MiB part).  NOTE: one full padded image lives in
    # VMEM; very large feature maps would need an H-halo manual-DMA variant.
    while tile_h > 1 and _block_bytes(tile_h) > vmem_budget_bytes:
        tile_h = _cdiv(tile_h, 2)

    num_t = _cdiv(ho, tile_h)
    ho_pad = num_t * tile_h
    hp2 = (ho_pad - 1) * stride + dilation * (kh - 1) + 1
    hp_arr = max(hp, hp2)                    # padded rows the kernel may read

    # ---- input prep: NCHW -> padded NHWC bf16 (one pass, no 9x im2col) ----
    x_nhwc = jnp.transpose(x, (0, 2, 3, 1))
    x_pad = jnp.pad(
        x_nhwc,
        ((0, 0), (padding, hp_arr - h - padding), (padding, padding), (0, 0)),
    ).astype(jnp.bfloat16)

    # ---- fold BatchNorm: scale into the weight, shift into a bias vector ----
    inv = (bn_gamma / jnp.sqrt(running_var + eps)).astype(jnp.float32)
    shift = bn_beta.astype(jnp.float32) - running_mean.astype(jnp.float32) * inv
    if bias is not None:
        shift = shift + bias.astype(jnp.float32) * inv
    w_f = weight.astype(jnp.float32) * inv[:, None, None, None]  # (Cout,Cin,kh,kw)
    wmat = jnp.transpose(w_f, (2, 3, 1, 0)).reshape(kh * kw, cin, cout)
    wmat = jnp.pad(wmat, ((0, 0), (0, 0), (0, cout_p - cout))).astype(jnp.bfloat16)
    shift2 = jnp.pad(shift.reshape(1, cout),
                     ((0, 0), (0, cout_p - cout))).astype(jnp.float32)

    if fuse_taps:
        wmat = wmat.reshape(kh * kw * cin, cout_p)   # row = idx*cin + c
        w_spec = pl.BlockSpec((kh * kw * cin, cout_p), lambda b, t: (0, 0))
        scratch_shapes = []
    else:
        w_spec = pl.BlockSpec((kh * kw, cin, cout_p), lambda b, t: (0, 0, 0))
        scratch_shapes = [pltpu.VMEM((tile_h * wo, cout_p), jnp.float32)]

    kernel = functools.partial(
        _conv_bn_relu_kernel, kh=kh, kw=kw, stride=stride, dilation=dilation,
        tile_h=tile_h, wo=wo, relu=relu, fuse_taps=fuse_taps)

    flops = 2 * n * ho * wo * cin * kh * kw * cout
    bytes_accessed = int(x_pad.size * 2 + wmat.size * 2 + shift2.size * 4
                         + n * ho_pad * wo * cout_p * 4)
    vmem_limit = int(min(max(32 * 1024 * 1024,
                             _block_bytes(tile_h) + (2 << 20)),
                         48 * 1024 * 1024))

    out_pad = pl.pallas_call(
        kernel,
        out_shape=jax.ShapeDtypeStruct((n, ho_pad, wo, cout_p), jnp.float32),
        grid_spec=pltpu.PrefetchScalarGridSpec(
            num_scalar_prefetch=0,
            grid=(n, num_t),
            in_specs=[
                # Full padded image of batch element b; block index constant
                # along t so it is only re-fetched when b changes.
                pl.BlockSpec((1, hp_arr, wp, cin), lambda b, t: (b, 0, 0, 0)),
                w_spec,
                pl.BlockSpec((1, cout_p), lambda b, t: (0, 0)),
            ],
            out_specs=pl.BlockSpec((1, tile_h, wo, cout_p),
                                   lambda b, t: (b, t, 0, 0)),
            scratch_shapes=scratch_shapes,
        ),
        compiler_params=pltpu.CompilerParams(
            dimension_semantics=("parallel", "parallel"),
            vmem_limit_bytes=vmem_limit),
        cost_estimate=pl.CostEstimate(
            flops=flops, transcendentals=0, bytes_accessed=bytes_accessed),
    )(x_pad, wmat, shift2)

    # Slice off the Ho / Cout padding and return NCHW (module contract).
    out = out_pad[:, :ho, :, :cout]
    return jnp.transpose(out, (0, 3, 1, 2))


def _reference(x, weight, bias, gamma, beta, mean, var, *, stride, padding,
               dilation, relu, eps=1e-5, fold_dtype=None):
    """conv -> BN(eval) -> ReLU reference (BN folded into weight/bias)."""
    inv = gamma / jnp.sqrt(var + eps)
    w_f = weight * inv.reshape(-1, 1, 1, 1)
    b_f = beta - mean * inv
    if bias is not None:
        b_f = b_f + bias * inv
    xr, wr = x, w_f
    if fold_dtype is not None:               # mimic the kernel's input rounding
        xr = x.astype(fold_dtype).astype(jnp.float32)
        wr = w_f.astype(fold_dtype).astype(jnp.float32)
    y = jax.lax.conv_general_dilated(
        xr, wr,
        window_strides=(stride, stride),
        padding=[(padding, padding), (padding, padding)],
        rhs_dilation=(dilation, dilation),
        dimension_numbers=("NCHW", "OIHW", "NCHW"))
    y = y + b_f.reshape(1, -1, 1, 1)
    if relu:
        y = jnp.maximum(y, 0.0)
    return y


if __name__ == "__main__":
    # CConvBNReLU2d(in_channel=4, out_channel=8, kernel_size=3, q_num_bit=8,
    #               stride=1, padding=1, bias=False, relu=True)
    in_channel, out_channel, kernel_size = 4, 8, 3
    stride, padding, dilation, relu = 1, 1, 1, True

    key = jax.random.PRNGKey(0)
    kx, kw, kg, kb, km, kv = jax.random.split(key, 6)

    x = jax.random.normal(kx, (2, in_channel, 16, 16), dtype=jnp.float32)
    weight = jax.random.normal(
        kw, (out_channel, in_channel, kernel_size, kernel_size),
        dtype=jnp.float32)
    conv_bias = None  # module default: bias=False
    bn_weight = 1.0 + 0.1 * jax.random.normal(kg, (out_channel,), jnp.float32)
    bn_bias = 0.1 * jax.random.normal(kb, (out_channel,), jnp.float32)
    running_mean = 0.1 * jax.random.normal(km, (out_channel,), jnp.float32)
    running_var = jax.random.uniform(kv, (out_channel,), jnp.float32, 0.5, 1.5)

    out = conv_bn_relu2d(
        x, weight, conv_bias, bn_weight, bn_bias, running_mean, running_var,
        stride=stride, padding=padding, dilation=dilation, relu=relu)
    out = jax.block_until_ready(out)

    common = dict(stride=stride, padding=padding, dilation=dilation, relu=relu)
    ref_bf16 = _reference(x, weight, conv_bias, bn_weight, bn_bias,
                          running_mean, running_var,
                          fold_dtype=jnp.bfloat16, **common)
    ref_f32 = _reference(x, weight, conv_bias, bn_weight, bn_bias,
                         running_mean, running_var, **common)

    assert out.shape == (2, out_channel, 16, 16), out.shape
    # Strict check vs a reference with identical bf16 input/weight rounding.
    err_strict = float(jnp.max(jnp.abs(out - ref_bf16)))
    assert jnp.allclose(out, ref_bf16, atol=2e-3, rtol=2e-3), err_strict
    # Loose check vs the full-f32 reference (bf16 MXU inputs lose mantissa).
    err_f32 = float(jnp.max(jnp.abs(out - ref_f32)))
    assert jnp.allclose(out, ref_f32, atol=1.5e-1, rtol=2e-2), err_f32

    # TODO(synk): quantized path (if_quantize_forward=True) needs stateful
    # running min/max QParam updates + fake-quantize; only the float eval
    # forward is lowered here.
    print("KERNEL_OK")
</pallas_src>

<mosaic_0001>
module attributes {stable_mosaic.version = 11 : i64} {
  func.func @_conv_bn_relu_kernel(%arg0: i32, %arg1: i32, %arg2: memref<1x18x18x4xbf16, #tpu.memory_space<vmem>>, %arg3: memref<36x128xbf16, #tpu.memory_space<vmem>>, %arg4: memref<1x128xf32, #tpu.memory_space<vmem>>, %arg5: memref<1x16x16x128xf32, #tpu.memory_space<vmem>>) attributes {dimension_semantics = [#tpu.dimension_semantics<parallel>, #tpu.dimension_semantics<parallel>], iteration_bounds = array<i64: 2, 1>, scalar_prefetch = 0 : i64, scratch_operands = 0 : i64, tpu.core_type = #tpu.core_type<tc>, window_params = [{transform_indices = @transform_0, window_bounds = array<i64: 1, 18, 18, 4>}, {pipeline_mode = #tpu.pipeline_mode<synchronous>, transform_indices = @transform_1, window_bounds = array<i64: 36, 128>}, {pipeline_mode = #tpu.pipeline_mode<synchronous>, transform_indices = @transform_2, window_bounds = array<i64: 1, 128>}, {transform_indices = @transform_3, window_bounds = array<i64: 1, 16, 16, 128>}]} {
    %c16_i32 = arith.constant 16 : i32
    %0 = arith.muli %arg1, %c16_i32 : i32
    %1 = tpu.assume_multiple %0, 16 : i32
    %c0_i32 = arith.constant 0 : i32
    %2 = arith.addi %1, %c0_i32 : i32
    %c0 = arith.constant 0 : index
    %3 = arith.index_cast %2 : i32 to index
    %c0_0 = arith.constant 0 : index
    %c0_1 = arith.constant 0 : index
    %4 = vector.load %arg2[%c0, %3, %c0_0, %c0_1] : memref<1x18x18x4xbf16, #tpu.memory_space<vmem>>, vector<1x16x16x4xbf16>
    %5 = vector.shape_cast %4 : vector<1x16x16x4xbf16> to vector<16x16x4xbf16>
    %c0_i32_2 = arith.constant 0 : i32
    %6 = arith.addi %1, %c0_i32_2 : i32
    %c0_3 = arith.constant 0 : index
    %7 = arith.index_cast %6 : i32 to index
    %c1 = arith.constant 1 : index
    %c0_4 = arith.constant 0 : index
    %8 = vector.load %arg2[%c0_3, %7, %c1, %c0_4] : memref<1x18x18x4xbf16, #tpu.memory_space<vmem>>, vector<1x16x16x4xbf16>
    %9 = vector.shape_cast %8 : vector<1x16x16x4xbf16> to vector<16x16x4xbf16>
    %c0_i32_5 = arith.constant 0 : i32
    %10 = arith.addi %1, %c0_i32_5 : i32
    %c0_6 = arith.constant 0 : index
    %11 = arith.index_cast %10 : i32 to index
    %c2 = arith.constant 2 : index
    %c0_7 = arith.constant 0 : index
    %12 = vector.load %arg2[%c0_6, %11, %c2, %c0_7] : memref<1x18x18x4xbf16, #tpu.memory_space<vmem>>, vector<1x16x16x4xbf16>
    %13 = vector.shape_cast %12 : vector<1x16x16x4xbf16> to vector<16x16x4xbf16>
    %c1_i32 = arith.constant 1 : i32
    %14 = arith.addi %1, %c1_i32 : i32
    %c0_8 = arith.constant 0 : index
    %15 = arith.index_cast %14 : i32 to index
    %c0_9 = arith.constant 0 : index
    %c0_10 = arith.constant 0 : index
    %16 = vector.load %arg2[%c0_8, %15, %c0_9, %c0_10] : memref<1x18x18x4xbf16, #tpu.memory_space<vmem>>, vector<1x16x16x4xbf16>
    %17 = vector.shape_cast %16 : vector<1x16x16x4xbf16> to vector<16x16x4xbf16>
    %c1_i32_11 = arith.constant 1 : i32
    %18 = arith.addi %1, %c1_i32_11 : i32
    %c0_12 = arith.constant 0 : index
    %19 = arith.index_cast %18 : i32 to index
    %c1_13 = arith.constant 1 : index
    %c0_14 = arith.constant 0 : index
    %20 = vector.load %arg2[%c0_12, %19, %c1_13, %c0_14] : memref<1x18x18x4xbf16, #tpu.memory_space<vmem>>, vector<1x16x16x4xbf16>
    %21 = vector.shape_cast %20 : vector<1x16x16x4xbf16> to vector<16x16x4xbf16>
    %c1_i32_15 = arith.constant 1 : i32
    %22 = arith.addi %1, %c1_i32_15 : i32
    %c0_16 = arith.constant 0 : index
    %23 = arith.index_cast %22 : i32 to index
    %c2_17 = arith.constant 2 : index
    %c0_18 = arith.constant 0 : index
    %24 = vector.load %arg2[%c0_16, %23, %c2_17, %c0_18] : memref<1x18x18x4xbf16, #tpu.memory_space<vmem>>, vector<1x16x16x4xbf16>
    %25 = vector.shape_cast %24 : vector<1x16x16x4xbf16> to vector<16x16x4xbf16>
    %c2_i32 = arith.constant 2 : i32
    %26 = arith.addi %1, %c2_i32 : i32
    %c0_19 = arith.constant 0 : index
    %27 = arith.index_cast %26 : i32 to index
    %c0_20 = arith.constant 0 : index
    %c0_21 = arith.constant 0 : index
    %28 = vector.load %arg2[%c0_19, %27, %c0_20, %c0_21] : memref<1x18x18x4xbf16, #tpu.memory_space<vmem>>, vector<1x16x16x4xbf16>
    %29 = vector.shape_cast %28 : vector<1x16x16x4xbf16> to vector<16x16x4xbf16>
    %c2_i32_22 = arith.constant 2 : i32
    %30 = arith.addi %1, %c2_i32_22 : i32
    %c0_23 = arith.constant 0 : index
    %31 = arith.index_cast %30 : i32 to index
    %c1_24 = arith.constant 1 : index
    %c0_25 = arith.constant 0 : index
    %32 = vector.load %arg2[%c0_23, %31, %c1_24, %c0_25] : memref<1x18x18x4xbf16, #tpu.memory_space<vmem>>, vector<1x16x16x4xbf16>
    %33 = vector.shape_cast %32 : vector<1x16x16x4xbf16> to vector<16x16x4xbf16>
    %c2_i32_26 = arith.constant 2 : i32
    %34 = arith.addi %1, %c2_i32_26 : i32
    %c0_27 = arith.constant 0 : index
    %35 = arith.index_cast %34 : i32 to index
    %c2_28 = arith.constant 2 : index
    %c0_29 = arith.constant 0 : index
    %36 = vector.load %arg2[%c0_27, %35, %c2_28, %c0_29] : memref<1x18x18x4xbf16, #tpu.memory_space<vmem>>, vector<1x16x16x4xbf16>
    %37 = vector.shape_cast %36 : vector<1x16x16x4xbf16> to vector<16x16x4xbf16>
    %38 = tpu.concatenate %5, %9, %13, %17, %21, %25, %29, %33, %37 in 2 : vector<16x16x4xbf16>, vector<16x16x4xbf16>, vector<16x16x4xbf16>, vector<16x16x4xbf16>, vector<16x16x4xbf16>, vector<16x16x4xbf16>, vector<16x16x4xbf16>, vector<16x16x4xbf16>, vector<16x16x4xbf16> -> vector<16x16x36xbf16>
    %39 = vector.shape_cast %38 : vector<16x16x36xbf16> to vector<256x36xbf16>
    %c0_30 = arith.constant 0 : index
    %c0_31 = arith.constant 0 : index
    %40 = vector.load %arg3[%c0_30, %c0_31] : memref<36x128xbf16, #tpu.memory_space<vmem>>, vector<36x128xbf16>
    %cst = arith.constant dense<0.000000e+00> : vector<256x128xf32>
    %41 = tpu.matmul %39, %40, %cst {dimension_numbers = #tpu.dot_dimension_numbers<[1], [0], [0], [1], [0, 0, 1, 1], [], []>} : vector<256x36xbf16>, vector<36x128xbf16>, vector<256x128xf32> -> vector<256x128xf32>
    %c0_32 = arith.constant 0 : index
    %c0_33 = arith.constant 0 : index
    %42 = vector.load %arg4[%c0_32, %c0_33] : memref<1x128xf32, #tpu.memory_space<vmem>>, vector<1x128xf32>
    %43 = vector.broadcast %42 : vector<1x128xf32> to vector<256x128xf32>
    %44 = arith.addf %41, %43 : vector<256x128xf32>
    %cst_34 = arith.constant 0.000000e+00 : f32
    %45 = vector.broadcast %cst_34 : f32 to vector<256x128xf32>
    %46 = arith.maximumf %44, %45 : vector<256x128xf32>
    %47 = vector.shape_cast %46 : vector<256x128xf32> to vector<16x16x128xf32>
    %c0_35 = arith.constant 0 : index
    %c0_36 = arith.constant 0 : index
    %c0_37 = arith.constant 0 : index
    %c0_38 = arith.constant 0 : index
    %48 = vector.load %arg5[%c0_35, %c0_36, %c0_37, %c0_38] : memref<1x16x16x128xf32, #tpu.memory_space<vmem>>, vector<1x16x16x128xf32>
    %49 = vector.shape_cast %48 : vector<1x16x16x128xf32> to vector<16x16x128xf32>
    %50 = vector.shape_cast %47 : vector<16x16x128xf32> to vector<1x16x16x128xf32>
    tpu.vector_store %arg5[%c0_35, %c0_36, %c0_37, %c0_38], %50 {strides = array<i32>} : memref<1x16x16x128xf32, #tpu.memory_space<vmem>>, vector<1x16x16x128xf32>,
    return
  }
  func.func @transform_0(%arg0: i32, %arg1: i32) -> (i32, i32, i32, i32) {
    %c0_i32 = arith.constant 0 : i32
    %c0_i32_0 = arith.constant 0 : i32
    %c0_i32_1 = arith.constant 0 : i32
    %c0_i32_2 = arith.constant 0 : i32
    return %arg0, %c0_i32, %c0_i32_0, %c0_i32_1 : i32, i32, i32, i32
  }
  func.func @transform_1(%arg0: i32, %arg1: i32) -> (i32, i32) {
    %c0_i32 = arith.constant 0 : i32
    %c0_i32_0 = arith.constant 0 : i32
    %c0_i32_1 = arith.constant 0 : i32
    return %c0_i32, %c0_i32_0 : i32, i32
  }
  func.func @transform_2(%arg0: i32, %arg1: i32) -> (i32, i32) {
    %c0_i32 = arith.constant 0 : i32
    %c0_i32_0 = arith.constant 0 : i32
    %c0_i32_1 = arith.constant 0 : i32
    return %c0_i32, %c0_i32_0 : i32, i32
  }
  func.func @transform_3(%arg0: i32, %arg1: i32) -> (i32, i32, i32, i32) {
    %c0_i32 = arith.constant 0 : i32
    %c0_i32_0 = arith.constant 0 : i32
    %c0_i32_1 = arith.constant 0 : i32
    return %arg0, %arg1, %c0_i32, %c0_i32_0 : i32, i32, i32, i32
  }
}

</mosaic_0001>

<bundles_post_ra>
// kernel: tpu_custom_call.1
= control target key start
LH: loop header
LB: loop body
LE: loop exit
PB: predicated region body
PF: predicated region fallthrough
CT: control target
= control target key end

     0   :  { %8 = vsyncpa [#allocation3], 0  ;;  %s4408_s0 = inlined_call_operand.vmem [shape: bf16[2,18,18,4], index: 0, kind: input, shape index: {}]   ;;  %s4409_s1 = inlined_call_operand.vmem [shape: bf16[36,128], index: 1, kind: input, shape index: {}]   ;;  %s4410_s2 = inlined_call_operand.vmem [shape: f32[1,128], index: 2, kind: input, shape index: {}]   ;;  %s4411_s3 = inlined_call_operand.hbm [shape: f32[2,16,16,128], index: 3, kind: output, shape index: {}]  }
   0x1   :  { %10 = vsyncpa [#allocation3 + $0x1], 0  ;;  %s3094_s12 = smov 0   ;;  %s3096_s13 = smov 0  }
   0x2   :  { %s3098_s14 = smov 0   ;;  %s3100_s15 = smov 0  }
   0x3   :  { %s3102_s16 = smov 0   ;;  %s3104_s17 = smov 0  }
   0x4 LB: > { %s2475_s18 = sadd.s32 4294967295, %s3063_s17   ;;  %s2476_s19 = sadd.s32 4294967294, %s3063_s17   ;;  %s3063_s17 = sphi %s3104_s17, %s16_s17   ;;  %s3059_s16 = sphi %s3102_s16, %s4424_s16   ;;  %s3055_s15 = sphi %s3100_s15, %s4423_s15   ;;  %s3051_s14 = sphi %s3098_s14, %s4422_s14   ;;  %s3047_s13 = sphi %s3096_s13, %s4421_s13   ;;  %s3043_s12 = sphi %s3094_s12, %s4420_s12  }
   0x5   : > { %s28_s20 = sadd.s32 1, %s3059_s16  ;;  %s105_s21 = sadd.s32 1, %s3051_s14 }
   0x6   : > { %p30_p0 = scmp.ge.s32.totalorder %s28_s20, 2  ;;  %p115_p1 = scmp.ne.s32.totalorder %s3051_s14, %s3047_s13 }
   0x7   : > { %p116_p2 = scmp.eq.s32.totalorder %s2475_s18, 1  ;;  %p121_p3 = scmp.ne.s32.totalorder %s3047_s13, %s3043_s12 }
   0x8   : > { %s4426_s20 = smov (%p30_p0, %s28_s20), 0  ;;  %p122_p5 = scmp.eq.s32.totalorder %s2476_s19, 1 }
   0x9   : > { %p3134_p4 = por %p116_p2, %p115_p1  ;;  %s100_s23 = ssub.s32 %s3059_s16, %s4426_s20 }
   0xa   : > { %p2479_p6 = scmp.ge.s32.totalorder %s3063_s17, 1  ;;  %p103_p7 = scmp.eq.s32.totalorder %s100_s23, 0 }
   0xb   : > { %p3141_p8 = por %p122_p5, %p121_p3  ;;  %p154_p9 = scmp.lt.s32.totalorder %s3063_s17, 3 }
   0xc   : > { %s3147_s25 = scalar_select %p103_p7, %s3051_s14, %s105_s21  }
   0xd   : > { %p155_p10 = pnand %p2479_p6, %p154_p9 }
   0xf   : > { %158 = sbr.rel (%p155_p10) target bundleno = 633 (0x279), region = 32 }
  0x14   : > { %p178_p11 = scmp.lt.s32.totalorder %s3055_s15, 1  ;;  %vm517_vm0 = vsmask.f32 7424  ;;  %s3065_s4 = smov 4   ;;  %vm790_vm1 = vcmask 1046528   ;;  %vm1895_vm2 = vcmask 31744  }
  0x15   : > { %s3066_s5 = smov 8   ;;  %s3067_s6 = smov 12   ;;  %vm1928_vm3 = vcmask 64512   ;;  %vm1961_vm4 = vcmask 97280   ;;  %vm2216_vm5 = vcmask 1041408   ;;  %vm1994_vm6 = vcmask 130048  }
  0x16   : > { %s179_s26 = scalar_select %p178_p11, %s3055_s15, 1  ;;  %vm2027_vm7 = vcmask 162816   ;;  %vm2060_vm8 = vcmask 195584   ;;  %vm2093_vm9 = vcmask 228352   ;;  %vm2126_vm10 = vcmask 261120  }
  0x17   : > { %s3068_s7 = smov 16   ;;  %s3069_s8 = smov 24   ;;  %vm2183_vm11 = vcmask 293888  }
  0x18   : > { %s2842_s27 = smul.u32 216, %s179_s26  ;;  %s3070_s9 = smov 20  }
  0x19   : > { %s3071_s10 = smov 28   ;;  %s3072_s11 = smov 32  }
  0x1a   : > { %s3154_s30 = scalar_lea.vmem %s4408_s0, %s2842_s27  ;;  %s175_s28 = sand.u32 1, %s3047_s13  }
  0x1b   : > { %v3157_v0 = vld [vmem:[%s3154_s30 + $0x30] sm:$0xff]   ;;  %v225_v1 = vld [vmem:[%s3154_s30 + $0x38] sm:$0x1]  ;;  %v223_v6 = vld [vmem:[%s3154_s30 + $0x20] sm:$0x1]  ;;  %s3005_s27 = scalar_lea.hbm %s4411_s3, 512 }
  0x1c   : > { %v3161_v2 = vld [vmem:[%s3154_s30 + $0x18] sm:$0xff]   ;;  %v489_v3 = vunpack.c.l.b16 %v225_v1  ;;  %v567_v4 = vshrl.u32 %v3157_v0, 16  ;;  %v569_v5 = vshll.u32 %v3157_v0, 16  ;;  %v2643_v8 = vld [vmem:[%s3154_s30] sm:$0xff]   ;;  %v487_v9 = vunpack.c.l.b16 %v223_v6  ;;  %v221_v11 = vld [vmem:[%s3154_s30 + $0x8] sm:$0x1] }
  0x1d   : > { %v543_v7 = vshrl.u32 %v3161_v2, 16  ;;  %v545_v10 = vshll.u32 %v3161_v2, 16  ;;  %v519_v12 = vshrl.u32 %v2643_v8, 16  ;;  %v521_v13 = vshll.u32 %v2643_v8, 16  ;;  %v3171_v14 = vld [vmem:[%s3154_s30 + $0x60] sm:$0xff]   ;;  %v3201_v42 = vld [vmem:[%s3154_s30 + $0x48] sm:$0xff]  }
  0x1e   : > { %v3173_v15 = vpack.c.b16 %v489_v3, %v489_v3  ;;  %v571_v16 = vrot.slane %v569_v5, 1  ;;  %v485_v17 = vunpack.c.l.b16 %v221_v11  ;;  %v229_v18 = vld [vmem:[%s3154_s30 + $0x68] sm:$0x1]  ;;  %v615_v19 = vshrl.u32 %v3171_v14, 16  ;;  %v224_v30 = vld [vmem:[%s3154_s30 + $0x2c] sm:$0x1] }
  0x1f   : > { %v3177_v20 = vpack.c.b16 %v487_v9, %v487_v9  ;;  %v547_v21 = vrot.slane %v545_v10, 1  ;;  %v523_v22 = vrot.slane %v521_v13, 1  ;;  %v493_v23 = vunpack.c.l.b16 %v229_v18  ;;  %v3180_v24 = vld [vmem:[%s3154_s30 + $0x24] sm:$0xff]   ;;  %v227_v35 = vld [vmem:[%s3154_s30 + $0x50] sm:$0x1]  ;;  %v3213_v50 = vld [vmem:[%s3154_s30 + $0x3c] sm:$0xff]  }
  0x20   : > { %v3183_v25 = vld [vmem:[%s3154_s30 + $0x24] sm:$0xf0]  ;;  %v3185_v26 = vor.u32 %v571_v16, %v567_v4  ;;  %v574_v27 = vshll.u32 %v3173_v15, 16  ;;  %v3188_v28 = vpack.c.b16 %v485_v17, %v485_v17  ;;  %v617_v29 = vshll.u32 %v3171_v14, 16  ;;  %v3216_v51 = vld [vmem:[%s3154_s30 + $0x3c] sm:$0xf0] }
  0x21   : > { %v3192_v31 = vor.u32 %v547_v21, %v543_v7  ;;  %v550_v32 = vshll.u32 %v3177_v20, 16  ;;  %v524_v33 = vor.u32 %v523_v22, %v519_v12  ;;  %v3195_v34 = vpack.c.b16 %v493_v23, %v493_v23  ;;  %v226_v56 = vld [vmem:[%s3154_s30 + $0x44] sm:$0x1]  ;;  %v3226_v57 = vld [vmem:[%s3154_s30 + $0x54] sm:$0xff]   ;;  %v228_v3 = vld [vmem:[%s3154_s30 + $0x5c] sm:$0x1] }
  0x22   : > { %4416 = vst [vmem:[#allocation5_spill] sm:$0xff] %v3185_v26  ;;  %v576_v36 = vrot.slane %v574_v27, 1  ;;  %v526_v37 = vshll.u32 %v3188_v28, 16  ;;  %v619_v38 = vrot.slane %v617_v29, 1  ;;  %v488_v41 = vunpack.c.l.b16 %v224_v30  ;;  %v3229_v58 = vld [vmem:[%s3154_s30 + $0x54] sm:$0xf0] }
  0x23   : > { %v552_v39 = vrot.slane %v550_v32, 1  ;;  %v622_v40 = vshll.u32 %v3195_v34, 16  ;;  %v491_v46 = vunpack.c.l.b16 %v227_v35  ;;  %v591_v54 = vshrl.u32 %v3201_v42, 16  ;;  %v3240_v4 = vld [vmem:[%s3154_s30 + $0xc] sm:$0xff]   ;;  %v222_v16 = vld [vmem:[%s3154_s30 + $0x14] sm:$0x1] }
  0x24   : > { %v577_v43 = vsel %vm517_vm0, %v3185_v26, %v576_v36  ;;  %v528_v44 = vrot.slane %v526_v37, 1  ;;  %v3205_v45 = vor.u32 %v619_v38, %v615_v19  ;;  %v3210_v49 = vpack.c.b16 %v488_v41, %v488_v41  ;;  %v3243_v5 = vld [vmem:[%s3154_s30 + $0xc] sm:$0xf0]  ;;  %v3255_v21 = vld [vmem:[%s3154_s30 + $0x84] sm:$0xff]   ;;  %v232_v36 = vld [vmem:[%s3154_s30 + $0x8c] sm:$0x1] }
  0x25   : > { %718 = vrot.lane.b32.xlu2 %v577_v43, %s3065_s4  ;;  %v553_v47 = vsel %vm517_vm0, %v3192_v31, %v552_v39  ;;  %v624_v48 = vrot.slane %v622_v40, 1  ;;  %v3220_v53 = vpack.c.b16 %v491_v46, %v491_v46  ;;  %v593_v55 = vshll.u32 %v3201_v42, 16  ;;  %v3258_v22 = vld [vmem:[%s3154_s30 + $0x84] sm:$0xf0]  ;;  %v231_v43 = vld [vmem:[%s3154_s30 + $0x80] sm:$0x1] }
  0x26   : > { %4417 = vst [vmem:[#allocation6_spill] sm:$0xff] %v3205_v45  ;;  %714 = vrot.lane.b32.xlu1 %v553_v47, %s3065_s4  ;;  %v529_v52 = vsel %vm517_vm0, %v524_v33, %v528_v44  ;;  %v555_v60 = vshrl.u32 %v3180_v24, 16  ;;  %v557_v61 = vshll.u32 %v3180_v24, 16  ;;  %v562_v62 = vshll.u32 %v3210_v49, 16 }
  0x27   : > { %710 = vrot.lane.b32.xlu0 %v529_v52, %s3065_s4  ;;  %v625_v59 = vsel %vm517_vm0, %v3205_v45, %v624_v48  ;;  %v595_v63 = vrot.slane %v593_v55, 1  ;;  %v598_v1 = vshll.u32 %v3220_v53, 16  ;;  %v490_v8 = vunpack.c.l.b16 %v226_v56  ;;  %v3279_v56 = vld [vmem:[%s3154_s30 + $0x78] sm:$0xff]   ;;  %v2917_v45 = vld [vmem:[%s3154_s30 + $0x24] sm:$0xe] }
  0x28   : > { %v559_v6 = vrot.slane %v557_v61, 1  ;;  %v564_v7 = vrot.slane %v562_v62, 1  ;;  %v492_v13 = vunpack.c.l.b16 %v228_v3  ;;  %v579_v18 = vshrl.u32 %v3213_v50, 16  ;;  %v230_v3 = vld [vmem:[%s3154_s30 + $0x74] sm:$0x1] }
  0x29   : > { %v3245_v9 = vor.u32 %v595_v63, %v591_v54  ;;  %v600_v10 = vrot.slane %v598_v1, 1  ;;  %v3247_v12 = vpack.c.b16 %v490_v8, %v490_v8  ;;  %v581_v19 = vshll.u32 %v3213_v50, 16  ;;  %v3285_v63 = vld [vmem:[%s3154_s30 + $0x6c] sm:$0xff]  }
  0x2a   : > { %v560_v11 = vor.u32 %v559_v6, %v555_v60  ;;  %v3263_v29 = vpack.c.b16 %v492_v13, %v492_v13  ;;  %v603_v32 = vshrl.u32 %v3226_v57, 16  ;;  %v605_v33 = vshll.u32 %v3226_v57, 16  ;;  %v3288_v1 = vld [vmem:[%s3154_s30 + $0x6c] sm:$0xf0] }
  0x2b   : > { %v601_v17 = vsel %vm517_vm0, %v3245_v9, %v600_v10  ;;  %v586_v27 = vshll.u32 %v3247_v12, 16  ;;  %v583_v30 = vrot.slane %v581_v19, 1  ;;  %v486_v35 = vunpack.c.l.b16 %v222_v16 }
  0x2c   : > { %v565_v23 = vsel %vm517_vm0, %v560_v11, %v564_v7  ;;  %v610_v38 = vshll.u32 %v3263_v29, 16  ;;  %v607_v40 = vrot.slane %v605_v33, 1  ;;  %v531_v46 = vshrl.u32 %v3240_v4, 16 }
  0x2d   : > { %726 = vrot.lane.b32.xlu2 %v625_v59, %s3065_s4  ;;  %v588_v37 = vrot.slane %v586_v27, 1  ;;  %v584_v39 = vor.u32 %v583_v30, %v579_v18  ;;  %v3271_v41 = vpack.c.b16 %v486_v35, %v486_v35  ;;  %v533_v47 = vshll.u32 %v3240_v4, 16  ;;  %v235_v18 = vld [vmem:[%s3154_s30 + $0xb0] sm:$0x1]  ;;  %v3302_v27 = vld [vmem:[%s3154_s30 + $0xa8] sm:$0xff]  }
  0x2e   : > { %716 = vrot.lane.b32.xlu1 %v565_v23, %s3065_s4  ;;  %v612_v44 = vrot.slane %v610_v38, 1  ;;  %v496_v48 = vunpack.c.l.b16 %v232_v36  ;;  %v608_v54 = vor.u32 %v607_v40, %v603_v32  ;;  %v495_v61 = vunpack.c.l.b16 %v231_v43  ;;  %v3313_v40 = vld [vmem:[%s3154_s30 + $0x9c] sm:$0xf0] }
  0x2f   : > { %722 = vrot.lane.b32.xlu0 %v601_v17, %s3065_s4  ;;  %v589_v52 = vsel %vm517_vm0, %v584_v39, %v588_v37  ;;  %v538_v55 = vshll.u32 %v3271_v41, 16  ;;  %v535_v59 = vrot.slane %v533_v47, 1  ;;  %v639_v62 = vshrl.u32 %v3279_v56, 16  ;;  %v3310_v39 = vld [vmem:[%s3154_s30 + $0x9c] sm:$0xff]  }
  0x30   : > { %v3281_v60 = vpack.c.b16 %v496_v48, %v496_v48  ;;  %v613_v6 = vsel %vm517_vm0, %v608_v54, %v612_v44  ;;  %v651_v8 = vshrl.u32 %v3255_v21, 16  ;;  %v653_v10 = vshll.u32 %v3255_v21, 16  ;;  %v234_v48 = vld [vmem:[%s3154_s30 + $0xa4] sm:$0x1] }
  0x31   : > { %v540_v7 = vrot.slane %v538_v55, 1  ;;  %v536_v11 = vor.u32 %v535_v59, %v531_v46  ;;  %v3296_v16 = vpack.c.b16 %v495_v61, %v495_v61  ;;  %v641_v17 = vshll.u32 %v3279_v56, 16  ;;  %v233_v61 = vld [vmem:[%s3154_s30 + $0x98] sm:$0x1] }
  0x32   : > { %v658_v13 = vshll.u32 %v3281_v60, 16  ;;  %v655_v19 = vrot.slane %v653_v10, 1  ;;  %v494_v23 = vunpack.c.l.b16 %v230_v3  ;;  %v499_v38 = vunpack.c.l.b16 %v235_v18 }
  0x33   : > { %v541_v30 = vsel %vm517_vm0, %v536_v11, %v540_v7  ;;  %v643_v33 = vrot.slane %v641_v17, 1  ;;  %v646_v35 = vshll.u32 %v3296_v16, 16  ;;  %v687_v46 = vshrl.u32 %v3302_v27, 16  ;;  %v3330_v7 = vld [vmem:[%s3154_s30 + $0x90] sm:$0xff]  }
  0x34   : > { %v660_v32 = vrot.slane %v658_v13, 1  ;;  %v656_v36 = vor.u32 %v655_v19, %v651_v8  ;;  %v3307_v37 = vpack.c.b16 %v494_v23, %v494_v23  ;;  %v689_v47 = vshll.u32 %v3302_v27, 16  ;;  %v2914_v13 = vld [vmem:[%s3154_s30 + $0xc] sm:$0xe] }
  0x35   : > { %720 = vrot.lane.b32.xlu2 %v589_v52, %s3065_s4  ;;  %v3315_v43 = vor.u32 %v643_v33, %v639_v62  ;;  %v648_v44 = vrot.slane %v646_v35, 1  ;;  %v627_v54 = vshrl.u32 %v3285_v63, 16  ;;  %v629_v55 = vshll.u32 %v3285_v63, 16 }
  0x36   : > { %724 = vrot.lane.b32.xlu1 %v613_v6, %s3065_s4  ;;  %v661_v52 = vsel %vm517_vm0, %v656_v36, %v660_v32  ;;  %v634_v59 = vshll.u32 %v3307_v37, 16  ;;  %v3327_v3 = vpack.c.b16 %v499_v38, %v499_v38  ;;  %v691_v6 = vrot.slane %v689_v47, 1 }
  0x37   : > { %712 = vrot.lane.b32.xlu0 %v541_v30, %s3065_s4  ;;  %v649_v62 = vsel %vm517_vm0, %v3315_v43, %v648_v44  ;;  %v631_v8 = vrot.slane %v629_v55, 1  ;;  %v498_v11 = vunpack.c.l.b16 %v234_v48  ;;  %v497_v19 = vunpack.c.l.b16 %v233_v61  ;;  %v3349_v48 = vld [vmem:[%s3154_s30 + $0xb4] sm:$0xff]   ;;  %v2762_v61 = vld [vmem:[%s3154_s30] sm:$0xe] }
  0x38   : > { %v636_v10 = vrot.slane %v634_v59, 1  ;;  %v3334_v17 = vor.u32 %v691_v6, %v687_v46  ;;  %v694_v18 = vshll.u32 %v3327_v3, 16  ;;  %v665_v32 = vshll.u32 %v3330_v7, 16  ;;  %v2761_v59 = vld [vmem:[%s3154_s30] sm:$0xf0] }
  0x39   : > { %v632_v23 = vor.u32 %v631_v8, %v627_v54  ;;  %v3338_v30 = vpack.c.b16 %v498_v11, %v498_v11  ;;  %v3341_v35 = vpack.c.b16 %v497_v19, %v497_v19  ;;  %v663_v36 = vshrl.u32 %v3330_v7, 16  ;;  %v236_v11 = vld [vmem:[%s3154_s30 + $0xbc] sm:$0x1] }
  0x3a   : > { %v696_v33 = vrot.slane %v694_v18, 1  ;;  %v675_v44 = vshrl.u32 %v3310_v39, 16  ;;  %v677_v46 = vshll.u32 %v3310_v39, 16  ;;  %v667_v54 = vrot.slane %v665_v32, 1 }
  0x3b   : > { %v637_v38 = vsel %vm517_vm0, %v632_v23, %v636_v10  ;;  %v682_v47 = vshll.u32 %v3338_v30, 16  ;;  %v670_v55 = vshll.u32 %v3341_v35, 16  ;;  %v2915_v10 = vor.u32 %v2914_v13, %v3243_v5 }
  0x3c   : > { %v679_v6 = vrot.slane %v677_v46, 1  ;;  %v3362_v18 = vor.u32 %v667_v54, %v663_v36  ;;  %v2763_v32 = vor.u32 %v2762_v61, %v2761_v59  ;;  %v500_v26 = vunpack.c.l.b16 %v236_v11 }
  0x3d   : > { %732 = vrot.lane.b32.xlu2 %v661_v52, %s3065_s4  ;;  %v3352_v52 = vld [vmem:[%s3154_s30 + $0xb4] sm:$0xf0]  ;;  %v684_v8 = vrot.slane %v682_v47, 1  ;;  %v672_v19 = vrot.slane %v670_v55, 1  ;;  %v794_v5 = vrot.slane %v2915_v10, 1  ;;  %v792_v13 = vrot.slane %v3188_v28, 1 }
  0x3e   : > { %730 = vrot.lane.b32.xlu1 %v649_v62, %s3065_s4  ;;  %v697_v62 = vsel %vm517_vm0, %v3334_v17, %v696_v33  ;;  %v680_v23 = vor.u32 %v679_v6, %v675_v44  ;;  %v3372_v36 = vpack.c.b16 %v500_v26, %v500_v26  ;;  %v2767_v44 = vld [vmem:[%s3154_s30 + $0x30] sm:$0xf0]  ;;  %v791_v47 = vrot.slane %v2763_v32, 1  ;;  %v2765_v26 = vld [vmem:[%s3154_s30 + $0x18] sm:$0xe] }
  0x3f   : > { %728 = vrot.lane.b32.xlu0 %v637_v38, %s3065_s4  ;;  %v795_v38 = vrot.slane %v3271_v41, 1  ;;  %v673_v46 = vsel %vm517_vm0, %v3362_v18, %v672_v19  ;;  %v2768_v41 = vld [vmem:[%s3154_s30 + $0x30] sm:$0xe]  ;;  %v699_v54 = vshrl.u32 %v3349_v48, 16  ;;  %v701_v55 = vshll.u32 %v3349_v48, 16 }
  0x40   : > { %v685_v33 = vsel %vm517_vm0, %v680_v23, %v684_v8  ;;  %v706_v59 = vshll.u32 %v3372_v36, 16  ;;  %v2769_v6 = vor.u32 %v2768_v41, %v2767_v44  ;;  %v2764_v8 = vld [vmem:[%s3154_s30 + $0x18] sm:$0xf0]  ;;  %v2920_v10 = vld [vmem:[%s3154_s30 + $0x54] sm:$0xe]  ;;  %v793_v11 = vsel %vm790_vm1, %v791_v47, %v792_v13 }
  0x41   : > { %v796_v61 = vsel %vm790_vm1, %v794_v5, %v795_v38  ;;  %v2918_v23 = vor.u32 %v2917_v45, %v3183_v25  ;;  %v804_v32 = vrot.slane %v3173_v15, 1  ;;  %v2923_v5 = vld [vmem:[%s3154_s30 + $0x3c] sm:$0xe]  ;;  %v801_v13 = vrot.slane %v3210_v49, 1  ;;  %v2770_v45 = vld [vmem:[%s3154_s30 + $0x48] sm:$0xf0] }
  0x42   : > { %v708_v28 = vrot.slane %v706_v59, 1  ;;  %v798_v25 = vrot.slane %v3177_v20, 1  ;;  %v2771_v41 = vld [vmem:[%s3154_s30 + $0x48] sm:$0xe]  ;;  %v2926_v49 = vld [vmem:[%s3154_s30 + $0x6c] sm:$0xe] }
  0x43   : > { %v800_v44 = vrot.slane %v2918_v23, 1  ;;  %v2772_v59 = vor.u32 %v2771_v41, %v2770_v45  ;;  %v816_v45 = vrot.slane %v3195_v34, 1  ;;  %v2780_v41 = vld [vmem:[%s3154_s30 + $0x90] sm:$0xe] }
  0x45   : > { %738 = vrot.lane.b32.xlu2 %v697_v62, %s3065_s4  ;;  %v703_v62 = vrot.slane %v701_v55, 1  ;;  %v802_v55 = vsel %vm790_vm1, %v800_v44, %v801_v13 }
  0x46   : > { %736 = vrot.lane.b32.xlu1 %v685_v33, %s3065_s4  ;;  %v803_v33 = vrot.slane %v2769_v6, 1  ;;  %v2924_v6 = vor.u32 %v2923_v5, %v3216_v51  ;;  %v2929_v51 = vld [vmem:[%s3154_s30 + $0x9c] sm:$0xe] }
  0x47   : > { %734 = vrot.lane.b32.xlu0 %v673_v46, %s3065_s4  ;;  %v704_v19 = vor.u32 %v703_v62, %v699_v54  ;;  %v2766_v46 = vor.u32 %v2765_v26, %v2764_v8  ;;  %v2921_v54 = vor.u32 %v2920_v10, %v3229_v58  ;;  %v813_v62 = vrot.slane %v3263_v29, 1  ;;  %v2776_v8 = vld [vmem:[%s3154_s30 + $0x78] sm:$0xf0]  ;;  %v2777_v58 = vld [vmem:[%s3154_s30 + $0x78] sm:$0xe] }
  0x48   : > { %v805_v15 = vsel %vm790_vm1, %v803_v33, %v804_v32  ;;  %v810_v26 = vrot.slane %v3220_v53, 1  ;;  %v2778_v23 = vor.u32 %v2777_v58, %v2776_v8  ;;  %v2773_v32 = vld [vmem:[%s3154_s30 + $0x60] sm:$0xf0]  ;;  %v2774_v29 = vld [vmem:[%s3154_s30 + $0x60] sm:$0xe]  ;;  %v2927_v33 = vor.u32 %v2926_v49, %v3288_v1  ;;  %v3440_v58 = vld [vmem:[%s3154_s30 + $0xc] sm:$0xff]  }
  0x49   : > { %v709_v38 = vsel %vm517_vm0, %v704_v19, %v708_v28  ;;  %v797_v47 = vrot.slane %v2766_v46, 1  ;;  %v812_v20 = vrot.slane %v2921_v54, 1  ;;  %v809_v28 = vrot.slane %v2772_v59, 1  ;;  %v2779_v1 = vld [vmem:[%s3154_s30 + $0x90] sm:$0xf0] }
  0x4a   : > { %v807_v19 = vrot.slane %v3247_v12, 1  ;;  %v822_v53 = vrot.slane %v3296_v16, 1  ;;  %v821_v5 = vrot.slane %v2778_v23, 1  ;;  %v2775_v44 = vor.u32 %v2774_v29, %v2773_v32  ;;  %v2932_v12 = vld [vmem:[%s3154_s30 + $0x84] sm:$0xe] }
  0x4b   : > { %v814_v10 = vsel %vm790_vm1, %v812_v20, %v813_v62  ;;  %v818_v13 = vrot.slane %v2927_v33, 1  ;;  %v831_v49 = vrot.slane %v3338_v30, 1  ;;  %v828_v20 = vrot.slane %v3341_v35, 1  ;;  %v2782_v30 = vld [vmem:[%s3154_s30 + $0xa8] sm:$0xf0]  ;;  %v3457_v29 = vld [vmem:[%s3154_s30 + $0x24] sm:$0xff]  }
  0x4c   : > { %v815_v16 = vrot.slane %v2775_v44, 1  ;;  %v825_v8 = vrot.slane %v3281_v60, 1  ;;  %v834_v32 = vrot.slane %v3327_v3, 1  ;;  %v3468_v3 = vld [vmem:[%s3154_s30 + $0x54] sm:$0xff]   ;;  %v3476_v33 = vld [vmem:[%s3154_s30 + $0x3c] sm:$0xff]  }
  0x4d   : > { %841 = vrot.lane.b32.xlu2 %v796_v61, %s3066_s5  ;;  %v799_v61 = vsel %vm790_vm1, %v797_v47, %v798_v25  ;;  %v819_v25 = vrot.slane %v3307_v37, 1  ;;  %v2930_v47 = vor.u32 %v2929_v51, %v3313_v40  ;;  %v2935_v37 = vld [vmem:[%s3154_s30 + $0xb4] sm:$0xe]  ;;  %v3460_v51 = vld [vmem:[%s3154_s30 + $0x24] sm:$0xf0] }
  0x4e   : > { %839 = vrot.lane.b32.xlu1 %v793_v11, %s3066_s5  ;;  %v806_v11 = vrot.slane %v2924_v6, 1  ;;  %v817_v59 = vsel %vm790_vm1, %v815_v16, %v816_v45  ;;  %v3489_v44 = vld [vmem:[%s3154_s30 + $0x6c] sm:$0xf0]  ;;  %v3509_v45 = vld [vmem:[%s3154_s30 + $0x84] sm:$0xf0] }
  0x4f   : > { %740 = vrot.lane.b32.xlu0 %v709_v38, %s3065_s4  ;;  %v811_v38 = vsel %vm790_vm1, %v809_v28, %v810_v26  ;;  %v820_v54 = vsel %vm790_vm1, %v818_v13, %v819_v25  ;;  %v830_v34 = vrot.slane %v2930_v47, 1  ;;  %v3443_v28 = vld [vmem:[%s3154_s30 + $0xc] sm:$0xf0]  ;;  %v2506_v13 = vld [vmem:[%s3154_s30 + $0x9c] sm:$0xff]   ;;  %v3506_v25 = vld [vmem:[%s3154_s30 + $0x84] sm:$0xff]   ;;  %s2480_s4 = sshll.u32 %s175_s28, 8 }
  0x50   : > { %v808_v46 = vsel %vm790_vm1, %v806_v11, %v807_v19  ;;  %v837_v19 = vrot.slane %v3372_v36, 1  ;;  %v2514_v16 = vld [vmem:[%s3154_s30 + $0x14] sm:$0x1] }
  0x51   : > { %v832_v62 = vsel %vm790_vm1, %v830_v34, %v831_v49  ;;  %v3520_v47 = vld [vmem:[%s3154_s30 + $0xb4] sm:$0xff]   ;;  %v999_v34 = vunpack.c.l.b16 %v2514_v16 }
  0x55   : > { %847 = vrot.lane.b32.xlu2 %v805_v15, %s3066_s5  ;;  %v823_v15 = vsel %vm790_vm1, %v821_v5, %v822_v53  ;;  %v3479_v53 = vld [vmem:[%s3154_s30 + $0x3c] sm:$0xf0]  ;;  %v2498_v5 = vld [vmem:[%s3154_s30 + $0x6c] sm:$0xff]  }
  0x56   : > { %845 = vrot.lane.b32.xlu1 %v802_v55, %s3066_s5  ;;  %v2781_v55 = vor.u32 %v2780_v41, %v2779_v1  ;;  %v2522_v41 = vld [vmem:[%s3154_s30 + $0x74] sm:$0x1] }
  0x57   : > { %843 = vrot.lane.b32.xlu0 %v799_v61, %s3066_s5  ;;  %v2933_v61 = vor.u32 %v2932_v12, %v3258_v22  ;;  %v2783_v22 = vld [vmem:[%s3154_s30 + $0xa8] sm:$0xe] }
  0x58   : > { %v827_v40 = vrot.slane %v2781_v55, 1  ;;  %v2784_v11 = vor.u32 %v2783_v22, %v2782_v30  ;;  %v1007_v55 = vunpack.c.l.b16 %v2522_v41 }
  0x59   : > { %v824_v6 = vrot.slane %v2933_v61, 1 }
  0x5a   : > { %v829_v26 = vsel %vm790_vm1, %v827_v40, %v828_v20  ;;  %v833_v23 = vrot.slane %v2784_v11, 1  ;;  %v3534_v40 = vpack.c.b16 %v1007_v55, %v1007_v55  ;;  %v1034_v20 = vshll.u32 %v3440_v58, 16 }
  0x5b   : > { %v826_v35 = vsel %vm790_vm1, %v824_v6, %v825_v8  ;;  %v3542_v6 = vld [vmem:[%s3154_s30 + $0xc0] sm:$0xff]   ;;  %v1176_v8 = vshrl.u32 %v2506_v13, 16 }
  0x5c   : > { %v835_v36 = vsel %vm790_vm1, %v833_v23, %v834_v32  ;;  %v1135_v11 = vshll.u32 %v3534_v40, 16  ;;  %v2938_v23 = vld [vmem:[%s3154_s30 + $0x9c] sm:$0xe] }
  0x5d   : > { %853 = vrot.lane.b32.xlu2 %v814_v10, %s3066_s5  ;;  %v2936_v10 = vor.u32 %v2935_v37, %v3352_v52  ;;  %v1178_v37 = vshll.u32 %v2506_v13, 16 }
  0x5e   : > { %851 = vrot.lane.b32.xlu1 %v811_v38, %s3066_s5  ;;  %v3471_v38 = vld [vmem:[%s3154_s30 + $0x54] sm:$0xf0]  ;;  %v1137_v16 = vrot.slane %v1135_v11, 1 }
  0x5f   : > { %849 = vrot.lane.b32.xlu0 %v808_v46, %s3066_s5  ;;  %v836_v60 = vrot.slane %v2936_v10, 1  ;;  %v1180_v30 = vrot.slane %v1178_v37, 1  ;;  %v1128_v10 = vshrl.u32 %v2498_v5, 16  ;;  %v2586_v37 = vld [vmem:[%s3154_s30 + $0x80] sm:$0x1] }
  0x61   : > { %v838_v52 = vsel %vm790_vm1, %v836_v60, %v837_v19  ;;  %v1032_v60 = vshrl.u32 %v3440_v58, 16  ;;  %v1036_v19 = vrot.slane %v1034_v20, 1  ;;  %v1181_v32 = vor.u32 %v1180_v30, %v1176_v8 }
  0x63   : > { %v1037_v55 = vor.u32 %v1036_v19, %v1032_v60  ;;  %v2518_v19 = vld [vmem:[%s3154_s30 + $0x44] sm:$0x1] }
  0x65   : > { %859 = vrot.lane.b32.xlu2 %v823_v15, %s3066_s5 }
  0x66   : > { %857 = vrot.lane.b32.xlu1 %v820_v54, %s3066_s5  ;;  %v3523_v54 = vld [vmem:[%s3154_s30 + $0xb4] sm:$0xf0] }
  0x67   : > { %855 = vrot.lane.b32.xlu0 %v817_v59, %s3066_s5 }
  0x6d   : > { %865 = vrot.lane.b32.xlu2 %v832_v62, %s3066_s5 }
  0x6e   : > { %863 = vrot.lane.b32.xlu1 %v829_v26, %s3066_s5  ;;  %v3545_v26 = vpack.c.b16 %v999_v34, %v999_v34 }
  0x6f   : > { %861 = vrot.lane.b32.xlu0 %v826_v35, %s3066_s5 }
  0x75   : > { %951 = vrot.lane.b32.xlu2 %v3440_v58, %s3067_s6 }
  0x76   : > { %869 = vrot.lane.b32.xlu1 %v838_v52, %s3066_s5 }
  0x77   : > { %867 = vrot.lane.b32.xlu0 %v835_v36, %s3066_s5  ;;  %v1039_v36 = vshll.u32 %v3545_v26, 16 }
  0x7d   : > { %957 = vrot.lane.b32.xlu2 %v3157_v0, %s3067_s6 }
  0x7e   : > { %955 = vrot.lane.b32.xlu1 %v3457_v29, %s3067_s6 }
  0x7f   : > { %v3483_v46 = vpop.permute.xlu2 %718  ;;  %953 = vrot.lane.b32.xlu0 %v3161_v2, %s3067_s6  ;;  %v3501_v2 = vld [vmem:[%s3154_s30 + $0x9c] sm:$0xf0] }
  0x80   : > { %v2939_v30 = vor.u32 %v2938_v23, %v3501_v2 }
  0x85   : > { %963 = vrot.lane.b32.xlu2 %v3468_v3, %s3067_s6 }
  0x86   : > { %961 = vrot.lane.b32.xlu1 %v3201_v42, %s3067_s6  ;;  %v2526_v42 = vld [vmem:[%s3154_s30 + $0xa4] sm:$0x1] }
  0x87   : > { %v3495_v12 = vpop.permute.xlu2 %726  ;;  %959 = vrot.lane.b32.xlu0 %v3476_v33, %s3067_s6  ;;  %v1011_v15 = vunpack.c.l.b16 %v2526_v42  ;;  %v2590_v42 = vld [vmem:[%s3154_s30 + $0xb0] sm:$0x1] }
  0x88   : > { %v1523_v20 = vunpack.c.l.b16 %v2590_v42 }
  0x89   : > { %v3526_v59 = vpack.c.b16 %v1011_v15, %v1011_v15 }
  0x8a   : > { %v3572_v11 = vpack.c.b16 %v1523_v20, %v1523_v20 }
  0x8b   : > { %v1183_v22 = vshll.u32 %v3526_v59, 16 }
  0x8d   : > { %969 = vrot.lane.b32.xlu2 %v3279_v56, %s3067_s6  ;;  %v1185_v52 = vrot.slane %v1183_v22, 1  ;;  %v1519_v22 = vunpack.c.l.b16 %v2586_v37 }
  0x8e   : > { %967 = vrot.lane.b32.xlu1 %v2498_v5, %s3067_s6 }
  0x8f   : > { %v3512_v1 = vpop.permute.xlu2 %720  ;;  %965 = vrot.lane.b32.xlu0 %v3171_v14, %s3067_s6  ;;  %v1130_v14 = vshll.u32 %v2498_v5, 16  ;;  %v2941_v5 = vld [vmem:[%s3154_s30 + $0x6c] sm:$0xe]  ;;  %v1186_v34 = vsel %vm517_vm0, %v1181_v32, %v1185_v52  ;;  %v1339_v52 = vrot.slane %v2939_v30, 1  ;;  %v3577_v42 = vpack.c.b16 %v1519_v22, %v1519_v22 }
  0x91   : > { %v1132_v35 = vrot.slane %v1130_v14, 1  ;;  %v1041_v14 = vrot.slane %v1039_v36, 1  ;;  %v1340_v36 = vrot.slane %v3526_v59, 1  ;;  %v1647_v59 = vshll.u32 %v3577_v42, 16 }
  0x93   : > { %v1133_v15 = vor.u32 %v1132_v35, %v1128_v10  ;;  %v1042_v10 = vsel %vm517_vm0, %v1037_v55, %v1041_v14  ;;  %v2942_v35 = vor.u32 %v2941_v5, %v3489_v44  ;;  %v1328_v44 = vrot.slane %v3534_v40, 1 }
  0x94   : > { %v1695_v5 = vshll.u32 %v3572_v11, 16  ;;  %v1341_v55 = vsel %vm790_vm1, %v1339_v52, %v1340_v36  ;;  %v1082_v40 = vshll.u32 %v3476_v33, 16 }
  0x95   : > { %975 = vrot.lane.b32.xlu2 %v2506_v13, %s3067_s6  ;;  %v1138_v8 = vsel %vm517_vm0, %v1133_v15, %v1137_v16  ;;  %v1327_v23 = vrot.slane %v2942_v35, 1  ;;  %v1003_v15 = vunpack.c.l.b16 %v2518_v19  ;;  %v2827_v35 = vld [vmem:[%s3154_s30 + $0xa8] sm:$0xf0] }
  0x96   : > { %973 = vrot.lane.b32.xlu1 %v3330_v7, %s3067_s6  ;;  %v1697_v14 = vrot.slane %v1695_v5, 1 }
  0x97   : > { %v3530_v49 = vpop.permute.xlu2 %732  ;;  %971 = vrot.lane.b32.xlu0 %v3506_v25, %s3067_s6  ;;  %v3593_v20 = vpack.c.b16 %v1003_v15, %v1003_v15  ;;  %v2944_v15 = vld [vmem:[%s3154_s30 + $0x3c] sm:$0xe] }
  0x98   : > { %v3532_v61 = vpop.permute.xlu1 %714  ;;  %v1698_v19 = vsel %vm517_vm0, %v3334_v17, %v1697_v14  ;;  %v2582_v14 = vld [vmem:[%s3154_s30 + $0x50] sm:$0x1] }
  0x99   : > { %v3539_v62 = vpop.permute.xlu0 %710  ;;  %v1087_v52 = vshll.u32 %v3593_v20, 16 }
  0x9d   : > { %981 = vrot.lane.b32.xlu2 %v3542_v6, %s3067_s6 }
  0x9e   : > { %979 = vrot.lane.b32.xlu1 %v3520_v47, %s3067_s6 }
  0x9f   : > { %v3555_v13 = vpop.permute.xlu2 %738  ;;  %977 = vrot.lane.b32.xlu0 %v3302_v27, %s3067_s6  ;;  %s4276_s6 = scalar_lea.vmem [#allocation2], %s2480_s4 }
  0xa0   : > { %v3559_v41 = vpop.permute.xlu1 %716 }
  0xa1   : > { %v3563_v58 = vpop.permute.xlu0 %722 }
  0xa5   : > { %1247 = vrot.lane.b32.xlu2 %v1186_v34, %s3068_s7  ;;  %v1329_v34 = vsel %vm790_vm1, %v1327_v23, %v1328_v44  ;;  %v2822_v23 = vld [vmem:[%s3154_s30 + $0x78] sm:$0xe] }
  0xa6   : > { %1239 = vrot.lane.b32.xlu1 %v1138_v8, %s3068_s7 }
  0xa7   : > { %v842_v60 = vpop.permute.xlu2 %841  ;;  %1223 = vrot.lane.b32.xlu0 %v1042_v10, %s3068_s7  ;;  %v1649_v10 = vrot.slane %v1647_v59, 1  ;;  %v2947_v59 = vld [vmem:[%s3154_s30 + $0xc] sm:$0xe] }
  0xa8   : > { %v725_v32 = vpop.permute.xlu1 %724 }
  0xa9   : > { %v713_v2 = vpop.permute.xlu0 %712  ;;  %v1650_v44 = vsel %vm517_vm0, %v3315_v43, %v1649_v10  ;;  %v1852_v10 = vrot.slane %v3572_v11, 1  ;;  %v2945_v11 = vor.u32 %v2944_v15, %v3479_v53  ;;  %v2523_v15 = vld [vmem:[%s3154_s30 + $0x80] sm:$0x1] }
  0xaa   : > { %v1899_v16 = vsel %vm1895_vm2, %v3240_v4, %v713_v2  ;;  %v1905_v4 = vsel %vm1895_vm2, %v3157_v0, %v3483_v46  ;;  %v1080_v0 = vshrl.u32 %v3476_v33, 16  ;;  %v1084_v46 = vrot.slane %v1082_v40, 1  ;;  %v2821_v2 = vld [vmem:[%s3154_s30 + $0x78] sm:$0xf0] }
  0xab   : > { %v3589_v37 = vsel %vm1928_vm3, %v1899_v16, %v842_v60  ;;  %v2828_v60 = vld [vmem:[%s3154_s30 + $0xa8] sm:$0xe]  ;;  %v2823_v33 = vor.u32 %v2822_v23, %v2821_v2  ;;  %v1911_v40 = vsel %vm1895_vm2, %v3226_v57, %v725_v32  ;;  %v1840_v57 = vrot.slane %v3577_v42, 1  ;;  %v2753_v23 = vld [vmem:[%s3154_s30 + $0x18] sm:$0xff]  }
  0xac   : > { %v2829_v5 = vor.u32 %v2828_v60, %v2827_v35  ;;  %v1085_v16 = vor.u32 %v1084_v46, %v1080_v0  ;;  %v2578_v60 = vld [vmem:[%s3154_s30 + $0x20] sm:$0x1]  ;;  %v1515_v32 = vunpack.c.l.b16 %v2582_v14  ;;  %v1546_v53 = vshll.u32 %v2753_v23, 16 }
  0xad   : > { %1479 = vrot.lane.b32.xlu2 %v3279_v56, %s3069_s8  ;;  %v1839_v0 = vrot.slane %v2823_v33, 1  ;;  %v2908_v14 = vld [vmem:[%s3154_s30] sm:$0xff]  }
  0xae   : > { %1375 = vrot.lane.b32.xlu1 %v1341_v55, %s3070_s9  ;;  %v1089_v55 = vrot.slane %v1087_v52, 1  ;;  %v3634_v52 = vld [vmem:[%s3154_s30 + $0x48] sm:$0xff]   ;;  %v3642_v42 = vpack.c.b16 %v1515_v32, %v1515_v32 }
  0xaf   : > { %v848_v8 = vpop.permute.xlu2 %847  ;;  %1367 = vrot.lane.b32.xlu0 %v1329_v34, %s3070_s9 }
  0xb0   : > { %v731_v30 = vpop.permute.xlu1 %730  ;;  %v3600_v22 = vsel %vm1928_vm3, %v1905_v4, %v848_v8  ;;  %v1851_v8 = vrot.slane %v2829_v5, 1  ;;  %v1841_v5 = vsel %vm790_vm1, %v1839_v0, %v1840_v57  ;;  %v1599_v57 = vshll.u32 %v3642_v42, 16 }
  0xb1   : > { %v3609_v36 = vpop.permute.xlu0 %728 }
  0xb2   : > { %v1853_v2 = vsel %vm790_vm1, %v1851_v8, %v1852_v10  ;;  %v1897_v8 = vsel %vm1895_vm2, %v2908_v14, %v3539_v62  ;;  %v1304_v10 = vrot.slane %v3545_v26, 1  ;;  %v2809_v14 = vld [vmem:[%s3154_s30 + $0x18] sm:$0xf0] }
  0xb5   : > { %1759 = vrot.lane.b32.xlu2 %v1698_v19, %s3071_s10  ;;  %v1090_v19 = vsel %vm517_vm0, %v1085_v16, %v1089_v55  ;;  %v1594_v16 = vshll.u32 %v3634_v52, 16  ;;  %v1917_v55 = vsel %vm1895_vm2, %v3279_v56, %v731_v30 }
  0xb6   : > { %1751 = vrot.lane.b32.xlu1 %v1650_v44, %s3071_s10  ;;  %v1511_v44 = vunpack.c.l.b16 %v2578_v60  ;;  %v1592_v60 = vshrl.u32 %v3634_v52, 16 }
  0xb7   : > { %v854_v34 = vpop.permute.xlu2 %853  ;;  %1487 = vrot.lane.b32.xlu0 %v3302_v27, %s3069_s8  ;;  %v2948_v27 = vor.u32 %v2947_v59, %v3443_v28  ;;  %v1316_v28 = vrot.slane %v3593_v20, 1  ;;  %v1596_v0 = vrot.slane %v1594_v16, 1  ;;  %v1008_v20 = vunpack.c.l.b16 %v2523_v15 }
  0xb8   : > { %v3623_v4 = vsel %vm1928_vm3, %v1911_v40, %v854_v34  ;;  %v737_v35 = vpop.permute.xlu1 %736  ;;  %v1315_v34 = vrot.slane %v2945_v11, 1  ;;  %v3653_v59 = vpack.c.b16 %v1511_v44, %v1511_v44  ;;  %v1548_v11 = vrot.slane %v1546_v53, 1 }
  0xb9   : > { %v3631_v46 = vpop.permute.xlu0 %734  ;;  %v1303_v30 = vrot.slane %v2948_v27, 1  ;;  %v1597_v27 = vor.u32 %v1596_v0, %v1592_v60  ;;  %v3669_v16 = vpack.c.b16 %v1008_v20, %v1008_v20  ;;  %v2527_v60 = vld [vmem:[%s3154_s30 + $0xb0] sm:$0x1]  ;;  %v2909_v0 = vld [vmem:[%s3154_s30 + $0x18] sm:$0xff]   ;;  %v3696_v20 = vld [vmem:[%s3154_s30 + $0x84] sm:$0xf0] }
  0xba   : > { %v1317_v62 = vsel %vm790_vm1, %v1315_v34, %v1316_v28  ;;  %v1551_v44 = vshll.u32 %v3653_v59, 16  ;;  %v1903_v34 = vsel %vm1895_vm2, %v3180_v24, %v3559_v41  ;;  %v1901_v24 = vsel %vm1895_vm2, %v2909_v0, %v3532_v61  ;;  %v2803_v61 = vld [vmem:[%s3154_s30 + $0xa8] sm:$0xf0]  ;;  %v2798_v0 = vld [vmem:[%s3154_s30 + $0x78] sm:$0xe] }
  0xbb   : > { %v1305_v26 = vsel %vm790_vm1, %v1303_v30, %v1304_v10  ;;  %v1147_v30 = vshll.u32 %v3669_v16, 16  ;;  %v2810_v10 = vld [vmem:[%s3154_s30 + $0x18] sm:$0xe] }
  0xbd   : > { %1231 = vrot.lane.b32.xlu2 %v1090_v19, %s3068_s7 }
  0xbe   : > { %1887 = vrot.lane.b32.xlu1 %v1853_v2, %s3072_s11  ;;  %v1544_v2 = vshrl.u32 %v2753_v23, 16 }
  0xbf   : > { %v860_v33 = vpop.permute.xlu2 %859  ;;  %1879 = vrot.lane.b32.xlu0 %v1841_v5, %s3072_s11  ;;  %v1601_v5 = vrot.slane %v1599_v57, 1  ;;  %v3693_v57 = vld [vmem:[%s3154_s30 + $0x84] sm:$0xff]  }
  0xc0   : > { %v3650_v40 = vsel %vm1928_vm3, %v1917_v55, %v860_v33  ;;  %v840_v56 = vpop.permute.xlu1 %839  ;;  %v1923_v55 = vsel %vm1895_vm2, %v3310_v39, %v737_v35  ;;  %v1549_v53 = vor.u32 %v1548_v11, %v1544_v2  ;;  %v2815_v39 = vld [vmem:[%s3154_s30 + $0x48] sm:$0xf0]  ;;  %v2816_v35 = vld [vmem:[%s3154_s30 + $0x48] sm:$0xe] }
  0xc1   : > { %v1930_v19 = vsel %vm1928_vm3, %v1897_v8, %v840_v56  ;;  %v3663_v32 = vpop.permute.xlu0 %740  ;;  %v1602_v56 = vsel %vm517_vm0, %v1597_v27, %v1601_v5  ;;  %v1149_v27 = vrot.slane %v1147_v30, 1  ;;  %v2804_v5 = vld [vmem:[%s3154_s30 + $0xa8] sm:$0xe] }
  0xc5   : > { %1463 = vrot.lane.b32.xlu2 %v2753_v23, %s3069_s8  ;;  %v1553_v23 = vrot.slane %v1551_v44, 1  ;;  %v2811_v44 = vor.u32 %v2810_v10, %v2809_v14  ;;  %v2805_v10 = vor.u32 %v2804_v5, %v2803_v61  ;;  %v3735_v5 = vld [vmem:[%s3154_s30 + $0xb4] sm:$0xff]  }
  0xc6   : > { %1359 = vrot.lane.b32.xlu1 %v1317_v62, %s3070_s9  ;;  %v2817_v62 = vor.u32 %v2816_v35, %v2815_v39  ;;  %v1828_v39 = vrot.slane %v3642_v42, 1 }
  0xc7   : > { %v866_v33 = vpop.permute.xlu2 %865  ;;  %1351 = vrot.lane.b32.xlu0 %v1305_v26, %s3070_s9  ;;  %v1554_v11 = vsel %vm517_vm0, %v1549_v53, %v1553_v23  ;;  %v1012_v26 = vunpack.c.l.b16 %v2527_v60  ;;  %v1815_v14 = vrot.slane %v2811_v44, 1  ;;  %v2797_v60 = vld [vmem:[%s3154_s30 + $0x78] sm:$0xf0] }
  0xc8   : > { %v3675_v15 = vsel %vm1928_vm3, %v1923_v55, %v866_v33  ;;  %v846_v28 = vpop.permute.xlu1 %845  ;;  %v2587_v33 = vld [vmem:[%s3154_s30 + $0x8c] sm:$0x1]  ;;  %v1827_v23 = vrot.slane %v2817_v62, 1  ;;  %v1342_v62 = vrot.slane %v2805_v10, 1 }
  0xc9   : > { %v1936_v8 = vsel %vm1928_vm3, %v1903_v34, %v846_v28  ;;  %v844_v41 = vpop.permute.xlu0 %843  ;;  %v2910_v34 = vld [vmem:[%s3154_s30 + $0x48] sm:$0xff]   ;;  %v1028_v30 = vpack.c.b16 %v1012_v26, %v1012_v26 }
  0xca   : > { %v3699_v2 = vsel %vm1928_vm3, %v1901_v24, %v844_v41  ;;  %v1909_v28 = vsel %vm1895_vm2, %v2910_v34, %v3563_v58  ;;  %v1520_v24 = vunpack.c.l.b16 %v2587_v33 }
  0xcb   : > { %v1343_v44 = vrot.slane %v1028_v30, 1  ;;  %v1195_v26 = vshll.u32 %v1028_v30, 16 }
  0xcd   : > { %1743 = vrot.lane.b32.xlu2 %v1602_v56, %s3071_s10  ;;  %v1816_v56 = vrot.slane %v3653_v59, 1  ;;  %v1829_v59 = vsel %vm790_vm1, %v1827_v23, %v1828_v39  ;;  %v1344_v39 = vsel %vm790_vm1, %v1342_v62, %v1343_v44  ;;  %v1921_v44 = vsel %vm1895_vm2, %v3330_v7, %v3631_v46 }
  0xce   : > { %1735 = vrot.lane.b32.xlu1 %v1554_v11, %s3071_s10  ;;  %v2799_v11 = vor.u32 %v2798_v0, %v2797_v60  ;;  %v2950_v60 = vld [vmem:[%s3154_s30 + $0xb4] sm:$0xe]  ;;  %v1919_v7 = vsel %vm1895_vm2, %v3255_v21, %v3530_v49  ;;  %v2785_v49 = vld [vmem:[%s3154_s30 + $0x18] sm:$0xf0] }
  0xcf   : > { %v952_v55 = vpop.permute.xlu2 %951  ;;  %1471 = vrot.lane.b32.xlu0 %v3634_v52, %s3069_s8  ;;  %v1907_v52 = vsel %vm1895_vm2, %v3213_v50, %v3512_v1  ;;  %v1817_v61 = vsel %vm790_vm1, %v1815_v14, %v1816_v56  ;;  %v2949_v50 = vld [vmem:[%s3154_s30 + $0xb4] sm:$0xf0]  ;;  %v1652_v56 = vshrl.u32 %v3693_v57, 16 }
  0xd0   : > { %v3711_v53 = vsel %vm1961_vm4, %v1930_v19, %v952_v55  ;;  %v852_v35 = vpop.permute.xlu1 %851  ;;  %v1150_v19 = vsel %vm517_vm0, %v3315_v43, %v1149_v27  ;;  %v3731_v43 = vpack.c.b16 %v1520_v24, %v1520_v24  ;;  %v1654_v27 = vshll.u32 %v3693_v57, 16 }
  0xd1   : > { %v1942_v58 = vsel %vm1928_vm3, %v1909_v28, %v852_v35  ;;  %v850_v42 = vpop.permute.xlu0 %849  ;;  %v1915_v55 = vsel %vm1895_vm2, %v3285_v63, %v3609_v36  ;;  %v1330_v34 = vrot.slane %v2799_v11, 1  ;;  %v1331_v28 = vrot.slane %v3669_v16, 1  ;;  %v2911_v36 = vld [vmem:[%s3154_s30 + $0x60] sm:$0xff]   ;;  %v2591_v16 = vld [vmem:[%s3154_s30 + $0xbc] sm:$0x1] }
  0xd2   : > { %v3726_v41 = vsel %vm1928_vm3, %v1907_v52, %v850_v42  ;;  %v1197_v35 = vrot.slane %v1195_v26, 1  ;;  %v1656_v30 = vrot.slane %v1654_v27, 1  ;;  %v1659_v63 = vshll.u32 %v3731_v43, 16  ;;  %v2953_v52 = vld [vmem:[%s3154_s30 + $0x84] sm:$0xe] }
  0xd3   : > { %v1524_v11 = vunpack.c.l.b16 %v2591_v16  ;;  %v1843_v16 = vrot.slane %v3731_v43, 1 }
  0xd4   : > { %v1198_v24 = vsel %vm517_vm0, %v3334_v17, %v1197_v35  ;;  %v1657_v42 = vor.u32 %v1656_v30, %v1652_v56  ;;  %v1702_v17 = vshll.u32 %v3735_v5, 16  ;;  %v1700_v35 = vshrl.u32 %v3735_v5, 16 }
  0xd5   : > { %1241 = vrot.lane.b32.xlu2 %v1150_v19, %s3068_s7  ;;  %v1332_v19 = vsel %vm790_vm1, %v1330_v34, %v1331_v28  ;;  %v2951_v34 = vor.u32 %v2950_v60, %v2949_v50 }
  0xd6   : > { %1871 = vrot.lane.b32.xlu1 %v1829_v59, %s3072_s11  ;;  %v1661_v59 = vrot.slane %v1659_v63, 1  ;;  %v1704_v56 = vrot.slane %v1702_v17, 1  ;;  %v3815_v17 = vld [vmem:[%s3154_s30 + $0x54] sm:$0xff]  }
  0xd7   : > { %v958_v1 = vpop.permute.xlu2 %957  ;;  %1863 = vrot.lane.b32.xlu0 %v1817_v61, %s3072_s11  ;;  %v2519_v61 = vld [vmem:[%s3154_s30 + $0x50] sm:$0x1]  ;;  %v1854_v30 = vrot.slane %v2951_v34, 1  ;;  %v3822_v34 = vld [vmem:[%s3154_s30 + $0x24] sm:$0xff]  }
  0xd8   : > { %v3743_v33 = vsel %vm1961_vm4, %v1936_v8, %v958_v1  ;;  %v858_v23 = vpop.permute.xlu1 %857  ;;  %v1913_v8 = vsel %vm1895_vm2, %v2911_v36, %v3495_v12  ;;  %v1662_v1 = vsel %vm517_vm0, %v1657_v42, %v1661_v59 }
  0xd9   : > { %v1948_v14 = vsel %vm1928_vm3, %v1915_v55, %v858_v23  ;;  %v856_v10 = vpop.permute.xlu0 %855  ;;  %v1540_v55 = vpack.c.b16 %v1524_v11, %v1524_v11  ;;  %v2954_v23 = vor.u32 %v2953_v52, %v3696_v20  ;;  %v2912_v11 = vld [vmem:[%s3154_s30 + $0xa8] sm:$0xff]  }
  0xda   : > { %v3757_v0 = vsel %vm1928_vm3, %v1913_v8, %v856_v10  ;;  %v2786_v8 = vld [vmem:[%s3154_s30 + $0x18] sm:$0xe] }
  0xdb   : > { %v1855_v63 = vrot.slane %v1540_v55, 1  ;;  %v1707_v36 = vshll.u32 %v1540_v55, 16  ;;  %v1842_v20 = vrot.slane %v2954_v23, 1  ;;  %v2787_v59 = vor.u32 %v2786_v8, %v2785_v49  ;;  %v2579_v49 = vld [vmem:[%s3154_s30 + $0x2c] sm:$0x1] }
  0xdd   : > { %1377 = vrot.lane.b32.xlu2 %v1344_v39, %s3070_s9  ;;  %v1004_v39 = vunpack.c.l.b16 %v2519_v61  ;;  %v1856_v42 = vsel %vm790_vm1, %v1854_v30, %v1855_v63  ;;  %v1709_v43 = vrot.slane %v1707_v36, 1  ;;  %v3818_v61 = vld [vmem:[%s3154_s30 + $0x54] sm:$0xf0]  ;;  %v2791_v30 = vld [vmem:[%s3154_s30 + $0x48] sm:$0xf0] }
  0xde   : > { %1369 = vrot.lane.b32.xlu1 %v1332_v19, %s3070_s9  ;;  %v1927_v19 = vsel %vm1895_vm2, %v3349_v48, %v3663_v32  ;;  %v1925_v48 = vsel %vm1895_vm2, %v2912_v11, %v3555_v13  ;;  %v2792_v63 = vld [vmem:[%s3154_s30 + $0x48] sm:$0xe]  ;;  %v2956_v36 = vld [vmem:[%s3154_s30 + $0x24] sm:$0xe] }
  0xdf   : > { %v964_v12 = vpop.permute.xlu2 %963  ;;  %1249 = vrot.lane.b32.xlu0 %v1198_v24, %s3068_s7  ;;  %v3796_v60 = vpack.c.b16 %v1004_v39, %v1004_v39  ;;  %v1705_v24 = vor.u32 %v1704_v56, %v1700_v35  ;;  %v2583_v35 = vld [vmem:[%s3154_s30 + $0x5c] sm:$0x1] }
  0xe0   : > { %v3766_v62 = vsel %vm1961_vm4, %v1942_v58, %v964_v12  ;;  %v864_v26 = vpop.permute.xlu1 %863  ;;  %v2515_v58 = vld [vmem:[%s3154_s30 + $0x20] sm:$0x1]  ;;  %v1844_v12 = vsel %vm790_vm1, %v1842_v20, %v1843_v16  ;;  %v1516_v16 = vunpack.c.l.b16 %v2583_v35  ;;  %v1202_v35 = vshll.u32 %v3520_v47, 16 }
  0xe1   : > { %v3775_v27 = vsel %vm1928_vm3, %v1921_v44, %v864_v26  ;;  %v862_v46 = vpop.permute.xlu0 %861  ;;  %v1000_v50 = vunpack.c.l.b16 %v2515_v58  ;;  %v1099_v44 = vshll.u32 %v3796_v60, 16  ;;  %v1710_v13 = vsel %vm517_vm0, %v1705_v24, %v1709_v43  ;;  %v2955_v58 = vld [vmem:[%s3154_s30 + $0x24] sm:$0xf0] }
  0xe2   : > { %v3783_v28 = vsel %vm1928_vm3, %v1919_v7, %v862_v46  ;;  %v3854_v43 = vpack.c.b16 %v1516_v16, %v1516_v16 }
  0xe3   : > { %v1016_v52 = vpack.c.b16 %v1000_v50, %v1000_v50  ;;  %v1101_v46 = vrot.slane %v1099_v44, 1 }
  0xe5   : > { %1753 = vrot.lane.b32.xlu2 %v1662_v1, %s3071_s10  ;;  %v1051_v26 = vshll.u32 %v1016_v52, 16  ;;  %v1306_v1 = vrot.slane %v2787_v59, 1  ;;  %v1307_v55 = vrot.slane %v1016_v52, 1  ;;  %v1102_v20 = vsel %vm517_vm0, %v3245_v9, %v1101_v46  ;;  %v2528_v52 = vld [vmem:[%s3154_s30 + $0xbc] sm:$0x1] }
  0xe6   : > { %1489 = vrot.lane.b32.xlu1 %v3735_v5, %s3069_s8  ;;  %v1558_v59 = vshll.u32 %v3822_v34, 16  ;;  %v1013_v44 = vunpack.c.l.b16 %v2528_v52  ;;  %v1204_v52 = vrot.slane %v1202_v35, 1  ;;  %v2588_v35 = vld [vmem:[%s3154_s30 + $0x98] sm:$0x1] }
  0xe7   : > { %v970_v21 = vpop.permute.xlu2 %969  ;;  %1481 = vrot.lane.b32.xlu0 %v3693_v57, %s3069_s8  ;;  %v1053_v39 = vrot.slane %v1051_v26, 1  ;;  %v1308_v50 = vsel %vm790_vm1, %v1306_v1, %v1307_v55 }
  0xe8   : > { %v3793_v10 = vsel %vm1961_vm4, %v1948_v14, %v970_v21  ;;  %v870_v5 = vpop.permute.xlu1 %869 }
  0xe9   : > { %v1960_v14 = vsel %vm1928_vm3, %v1927_v19, %v870_v5  ;;  %v868_v32 = vpop.permute.xlu0 %867  ;;  %v1054_v19 = vsel %vm517_vm0, %v3192_v31, %v1053_v39  ;;  %v1512_v5 = vunpack.c.l.b16 %v2579_v49  ;;  %v2524_v31 = vld [vmem:[%s3154_s30 + $0x8c] sm:$0x1]  ;;  %v1560_v39 = vrot.slane %v1558_v59, 1 }
  0xea   : > { %v3809_v57 = vsel %vm1928_vm3, %v1925_v48, %v868_v32  ;;  %v2957_v48 = vor.u32 %v2956_v36, %v2955_v58  ;;  %v1611_v58 = vshll.u32 %v3854_v43, 16  ;;  %v1009_v46 = vunpack.c.l.b16 %v2524_v31 }
  0xeb   : > { %v1154_v36 = vshll.u32 %v3506_v25, 16 }
  0xec   : > { %v1613_v49 = vrot.slane %v1611_v58, 1 }
  0xed   : > { %1889 = vrot.lane.b32.xlu2 %v1856_v42, %s3072_s11  ;;  %v1156_v59 = vrot.slane %v1154_v36, 1 }
  0xee   : > { %1881 = vrot.lane.b32.xlu1 %v1844_v12, %s3072_s11  ;;  %v1319_v12 = vrot.slane %v3796_v60, 1  ;;  %v1556_v60 = vshrl.u32 %v3822_v34, 16 }
  0xef   : > { %v3826_v7 = vpop.permute.xlu2 %975  ;;  %1761 = vrot.lane.b32.xlu0 %v1710_v13, %s3071_s10  ;;  %v1604_v13 = vshrl.u32 %v3815_v17, 16 }
  0xf0   : > { %v956_v23 = vpop.permute.xlu1 %955 }
  0xf1   : > { %v3832_v56 = vsel %vm1961_vm4, %v3699_v2, %v956_v23  ;;  %v954_v21 = vpop.permute.xlu0 %953  ;;  %v2793_v2 = vor.u32 %v2792_v63, %v2791_v30  ;;  %v3875_v63 = vpack.c.b16 %v1013_v44, %v1013_v44 }
  0xf2   : > { %v3841_v8 = vsel %vm1961_vm4, %v3589_v37, %v954_v21  ;;  %v1606_v37 = vshll.u32 %v3815_v17, 16 }
  0xf3   : > { %v1318_v11 = vrot.slane %v2793_v2, 1 }
  0xf4   : > { %v1608_v55 = vrot.slane %v1606_v37, 1 }
  0xf5   : > { %1353 = vrot.lane.b32.xlu2 %v1308_v50, %s3070_s9  ;;  %v1320_v50 = vsel %vm790_vm1, %v1318_v11, %v1319_v12  ;;  %v2962_v12 = vld [vmem:[%s3154_s30 + $0xb4] sm:$0xe] }
  0xf6   : > { %1233 = vrot.lane.b32.xlu1 %v1102_v20, %s3068_s7  ;;  %v3883_v20 = vpack.c.b16 %v1009_v46, %v1009_v46  ;;  %v2592_v46 = vld [vmem:[%s3154_s30 + $0xc8] sm:$0x1] }
  0xf7   : > { %v982_v24 = vpop.permute.xlu2 %981  ;;  %1225 = vrot.lane.b32.xlu0 %v1054_v19, %s3068_s7  ;;  %v1561_v19 = vor.u32 %v1560_v39, %v1556_v60  ;;  %v1831_v39 = vrot.slane %v3854_v43, 1 }
  0xf8   : > { %v3851_v42 = vsel %vm1961_vm4, %v1960_v14, %v982_v24  ;;  %v962_v9 = vpop.permute.xlu1 %961  ;;  %v1528_v14 = vpack.c.b16 %v1512_v5, %v1512_v5  ;;  %v1200_v24 = vshrl.u32 %v3520_v47, 16  ;;  %v1159_v31 = vshll.u32 %v3883_v20, 16 }
  0xf9   : > { %v3861_v32 = vsel %vm1961_vm4, %v3726_v41, %v962_v9  ;;  %v960_v26 = vpop.permute.xlu0 %959  ;;  %v1818_v41 = vrot.slane %v2957_v48, 1  ;;  %v1152_v9 = vshrl.u32 %v3506_v25, 16 }
  0xfa   : > { %v3867_v1 = vsel %vm1961_vm4, %v3600_v22, %v960_v26  ;;  %v1819_v23 = vrot.slane %v1528_v14, 1  ;;  %v1563_v30 = vshll.u32 %v1528_v14, 16  ;;  %v2959_v22 = vld [vmem:[%s3154_s30 + $0x54] sm:$0xe]  ;;  %v2163_v14 = vld [vmem:[%s4409_s1 + $0x10] sm:$0x3]  ;;  %v1205_v44 = vor.u32 %v1204_v52, %v1200_v24 }
  0xfb   : > { %v2960_v47 = vor.u32 %v2959_v22, %v3818_v61  ;;  %v1157_v58 = vor.u32 %v1156_v59, %v1152_v9  ;;  %v1525_v22 = vunpack.c.l.b16 %v2592_v46  ;;  %v2758_v24 = vld [vmem:[%s3154_s30 + $0x90] sm:$0xff]  }
  0xfc   : > { %v1820_v2 = vsel %vm790_vm1, %v1818_v41, %v1819_v23  ;;  %v1565_v5 = vrot.slane %v1563_v30, 1  ;;  %v1161_v41 = vrot.slane %v1159_v31, 1  ;;  %v1666_v9 = vshll.u32 %v2758_v24, 16 }
  0xfd   : > { %1473 = vrot.lane.b32.xlu2 %v3815_v17, %s3069_s8  ;;  %v1609_v17 = vor.u32 %v1608_v55, %v1604_v13  ;;  %v2177_v13 = vunpack.c.l.b16 %v2163_v14  ;;  %v1830_v60 = vrot.slane %v2960_v47, 1  ;;  %v1212_v47 = vshrl.u32 %v3542_v6, 16 }
  0xfe   : > { %1465 = vrot.lane.b32.xlu1 %v3822_v34, %s3069_s8  ;;  %v1207_v34 = vshll.u32 %v3875_v63, 16  ;;  %v1566_v25 = vsel %vm517_vm0, %v1561_v19, %v1565_v5  ;;  %v1162_v43 = vsel %vm517_vm0, %v1157_v58, %v1161_v41  ;;  %v1521_v19 = vunpack.c.l.b16 %v2588_v35 }
  0xff   : > { %v3881_v21 = vpop.permute.xlu2 %1247  ;;  %1361 = vrot.lane.b32.xlu0 %v1320_v50, %s3070_s9  ;;  %v1614_v48 = vsel %vm517_vm0, %v1609_v17, %v1613_v49  ;;  %v2180_v61 = vpack.c.b16 %v2177_v13, %v2177_v13  ;;  %v1214_v5 = vshll.u32 %v3542_v6, 16  ;;  %v1664_v58 = vshrl.u32 %v2758_v24, 16 }
 0x100   : > { %v3886_v16 = vpop.permute.xlu1 %967  ;;  %v1209_v26 = vrot.slane %v1207_v34, 1  ;;  %v3932_v34 = vpack.c.b16 %v1525_v22, %v1525_v22  ;;  %v3939_v31 = vpack.c.b16 %v1521_v19, %v1521_v19  ;;  %v1668_v41 = vrot.slane %v1666_v9, 1  ;;  %v2968_v9 = vld [vmem:[%s3154_s30 + $0x54] sm:$0xe] }
 0x101   : > { %v966_v37 = vpop.permute.xlu0 %965  ;;  %v2218_v36 = vsel %vm2216_vm5, %v2180_v61, 0 }
 0x102   : > { %v3894_v11 = vsel %vm1961_vm4, %v3623_v4, %v966_v37  ;;  %v2965_v4 = vld [vmem:[%s3154_s30 + $0x84] sm:$0xe]  ;;  %v1210_v30 = vsel %vm517_vm0, %v1205_v44, %v1209_v26  ;;  %2834 = vmatpush.bf16.msra.mxu2 %v2218_v36  ;;  %2835 = vmatpush.bf16.msra.mxu3 %v2218_v36  ;;  %v2516_v37 = vld [vmem:[%s3154_s30 + $0x2c] sm:$0x1]  ;;  %v1719_v26 = vshll.u32 %v3932_v34, 16 }
 0x103   : > { %2225 = vmatpush.bf16.msra.mxu0 %v2218_v36  ;;  %2833 = vmatpush.bf16.msra.mxu1 %v2218_v36  ;;  %v2966_v52 = vor.u32 %v2965_v4, %v3509_v45  ;;  %v2639_v45 = vld [vmem:[%s4409_s1] sm:$0xff]  ;;  %v1001_v4 = vunpack.c.l.b16 %v2516_v37  ;;  %v2520_v37 = vld [vmem:[%s3154_s30 + $0x5c] sm:$0x1] }
 0x105   : > { %1865 = vrot.lane.b32.xlu2 %v1820_v2, %s3072_s11  ;;  %v2963_v2 = vor.u32 %v2962_v12, %v3523_v54  ;;  %v1216_v12 = vrot.slane %v1214_v5, 1 }
 0x106   : > { %1745 = vrot.lane.b32.xlu1 %v1614_v48, %s3071_s10  ;;  %v1346_v48 = vrot.slane %v3875_v63, 1  ;;  %v1334_v63 = vrot.slane %v3883_v20, 1 }
 0x107   : > { %v3907_v55 = vpop.permute.xlu2 %1479  ;;  %1737 = vrot.lane.b32.xlu0 %v1566_v25, %s3071_s10  ;;  %v1345_v59 = vrot.slane %v2963_v2, 1  ;;  %v1333_v25 = vrot.slane %v2966_v52, 1  ;;  %v3960_v20 = vor.u32 %v1216_v12, %v1212_v47  ;;  %v2824_v2 = vld [vmem:[%s3154_s30 + $0x90] sm:$0xf0]  ;;  %v2825_v52 = vld [vmem:[%s3154_s30 + $0x90] sm:$0xe] }
 0x108   : > { %v974_v23 = vpop.permute.xlu1 %973  ;;  %v2971_v47 = vld [vmem:[%s3154_s30 + $0x24] sm:$0xe] }
 0x109   : > { %v3915_v50 = vsel %vm1961_vm4, %v3783_v28, %v974_v23  ;;  %v972_v17 = vpop.permute.xlu0 %971  ;;  %v2640_v28 = vld [vmem:[%s4409_s1 + $0x8] sm:$0xff]  ;;  %v1347_v61 = vsel %vm790_vm1, %v1345_v59, %v1346_v48  ;;  %v1671_v23 = vshll.u32 %v3939_v31, 16 }
 0x10a   : > { %v3920_v49 = vsel %vm1961_vm4, %v3650_v40, %v972_v17  ;;  %v1832_v40 = vsel %vm790_vm1, %v1830_v60, %v1831_v39  ;;  %2837 = vmatpush.bf16.msra.mxu2 %v2640_v28  ;;  %2838 = vmatpush.bf16.msra.mxu3 %v2640_v28  ;;  %v1721_v60 = vrot.slane %v1719_v26, 1  ;;  %v3963_v39 = vpack.c.b16 %v1001_v4, %v1001_v4  ;;  %v2830_v17 = vld [vmem:[%s3154_s30 + $0xc0] sm:$0xf0] }
 0x10b   : > { %2226 = vmatpush.bf16.msra.mxu0 %v2640_v28  ;;  %2836 = vmatpush.bf16.msra.mxu1 %v2640_v28  ;;  %v1673_v22 = vrot.slane %v1671_v23, 1  ;;  %v1056_v28 = vshrl.u32 %v3457_v29, 16  ;;  %v1858_v4 = vrot.slane %v3932_v34, 1  ;;  %v1106_v23 = vshll.u32 %v3468_v3, 16 }
 0x10c   : > { %v1722_v19 = vsel %vm517_vm0, %v3960_v20, %v1721_v60  ;;  %v2969_v60 = vor.u32 %v2968_v9, %v3471_v38 }
 0x10d   : > { %1251 = vrot.lane.b32.xlu2 %v1210_v30, %s3068_s7  ;;  %v1669_v30 = vor.u32 %v1668_v41, %v1664_v58  ;;  %v1846_v41 = vrot.slane %v3939_v31, 1  ;;  %v1108_v38 = vrot.slane %v1106_v23, 1  ;;  %v2818_v23 = vld [vmem:[%s3154_s30 + $0x60] sm:$0xf0] }
 0x10e   : > { %1243 = vrot.lane.b32.xlu1 %v1162_v43, %s3068_s7  ;;  %2840 = vmatpush.bf16.msra.mxu2 %v2639_v45  ;;  %v2831_v43 = vld [vmem:[%s3154_s30 + $0xc0] sm:$0xe] }
 0x10f   : > { %v3935_v54 = vpop.permute.xlu2 %1759  ;;  %1873 = vrot.lane.b32.xlu0 %v1832_v40, %s3072_s11  ;;  %2841 = vmatpush.bf16.msra.mxu3 %v2639_v45  ;;  %v1674_v59 = vsel %vm517_vm0, %v1669_v30, %v1673_v22  ;;  %v2832_v48 = vor.u32 %v2831_v43, %v2830_v17  ;;  %v3998_v30 = vld [vmem:[%s3154_s30 + $0x30] sm:$0xff]   ;;  %v2972_v17 = vor.u32 %v2971_v47, %v3460_v51 }
 0x110   : > { %v980_v14 = vpop.permute.xlu1 %979  ;;  %2227 = vmatpush.bf16.msra.mxu0 %v2639_v45  ;;  %2839 = vmatpush.bf16.msra.mxu1 %v2639_v45  ;;  %v2826_v45 = vor.u32 %v2825_v52, %v2824_v2  ;;  %v1570_v2 = vshll.u32 %v3998_v30, 16  ;;  %v1310_v52 = vrot.slane %v3963_v39, 1  ;;  %v1568_v9 = vshrl.u32 %v3998_v30, 16 }
 0x111   : > { %v3948_v44 = vsel %vm1961_vm4, %v3809_v57, %v980_v14  ;;  %v978_v13 = vpop.permute.xlu0 %977  ;;  %v1058_v57 = vshll.u32 %v3457_v29, 16  ;;  %v2580_v29 = vld [vmem:[%s3154_s30 + $0x38] sm:$0x1]  ;;  %v1857_v26 = vrot.slane %v2832_v48, 1  ;;  %v1309_v51 = vrot.slane %v2972_v17, 1 }
 0x112   : > { %v3954_v46 = vsel %vm1961_vm4, %v3675_v15, %v978_v13  ;;  %v1335_v15 = vsel %vm790_vm1, %v1333_v25, %v1334_v63  ;;  %v1005_v25 = vunpack.c.l.b16 %v2520_v37  ;;  %v1845_v58 = vrot.slane %v2826_v45, 1  ;;  %v2812_v17 = vld [vmem:[%s3154_s30 + $0x30] sm:$0xf0] }
 0x113   : > { %v1060_v5 = vrot.slane %v1058_v57, 1  ;;  %v1859_v34 = vsel %vm790_vm1, %v1857_v26, %v1858_v4  ;;  %v1311_v26 = vsel %vm790_vm1, %v1309_v51, %v1310_v52 }
 0x115   : > { %1483 = vrot.lane.b32.xlu2 %v2758_v24, %s3069_s8  ;;  %v1063_v24 = vshll.u32 %v3963_v39, 16  ;;  %v1061_v12 = vor.u32 %v1060_v5, %v1056_v28  ;;  %v1104_v28 = vshrl.u32 %v3468_v3, 16 }
 0x116   : > { %1379 = vrot.lane.b32.xlu1 %v1347_v61, %s3070_s9  ;;  %v1513_v61 = vunpack.c.l.b16 %v2580_v29  ;;  %v1979_v29 = vsel %vm1961_vm4, %v3757_v0, %v3886_v16 }
 0x117   : > { %v3966_v35 = vpop.permute.xlu2 %1231  ;;  %1371 = vrot.lane.b32.xlu0 %v1335_v15, %s3070_s9  ;;  %v1065_v14 = vrot.slane %v1063_v24, 1  ;;  %v1021_v15 = vpack.c.b16 %v1005_v25, %v1005_v25  ;;  %v1109_v45 = vor.u32 %v1108_v38, %v1104_v28 }
 0x118   : > { %v3969_v36 = vpop.permute.xlu1 %1239  ;;  %v4004_v43 = vpack.c.b16 %v1513_v61, %v1513_v61 }
 0x119   : > { %v3979_v40 = vpop.permute.xlu0 %1223  ;;  %v1066_v57 = vsel %vm517_vm0, %v1061_v12, %v1065_v14  ;;  %v1322_v31 = vrot.slane %v1021_v15, 1  ;;  %v1111_v5 = vshll.u32 %v1021_v15, 16  ;;  %v1987_v12 = vsel %vm1961_vm4, %v3775_v27, %v3826_v7  ;;  %v2584_v14 = vld [vmem:[%s3154_s30 + $0x68] sm:$0x1] }
 0x11a   : > { %v1575_v48 = vshll.u32 %v4004_v43, 16  ;;  %v2020_v25 = vsel %vm1994_vm6, %v1987_v12, %v3881_v21  ;;  %v2012_v21 = vsel %vm1994_vm6, %v1979_v29, %v3969_v36  ;;  %v1517_v16 = vunpack.c.l.b16 %v2584_v14  ;;  %v2800_v12 = vld [vmem:[%s3154_s30 + $0x90] sm:$0xf0] }
 0x11b   : > { %v1113_v47 = vrot.slane %v1111_v5, 1 }
 0x11c   : > { %v1577_v7 = vrot.slane %v1575_v48, 1 }
 0x11d   : > { %1763 = vrot.lane.b32.xlu2 %v1722_v19, %s3071_s10  ;;  %v1321_v19 = vrot.slane %v2969_v60, 1  ;;  %v1114_v0 = vsel %vm517_vm0, %v1109_v45, %v1113_v47 }
 0x11e   : > { %1755 = vrot.lane.b32.xlu1 %v1674_v59, %s3071_s10  ;;  %v1572_v59 = vrot.slane %v1570_v2, 1 }
 0x11f   : > { %v3988_v63 = vpop.permute.xlu2 %1463  ;;  %1491 = vrot.lane.b32.xlu0 %v3542_v6, %s3069_s8  ;;  %v1847_v6 = vsel %vm790_vm1, %v1845_v58, %v1846_v41  ;;  %v1323_v3 = vsel %vm790_vm1, %v1321_v19, %v1322_v31  ;;  %v2756_v58 = vld [vmem:[%s3154_s30 + $0x60] sm:$0xff]   ;;  %v1533_v19 = vpack.c.b16 %v1517_v16, %v1517_v16  ;;  %v4070_v16 = vld [vmem:[%s3154_s30 + $0xcc] sm:$0xff]  }
 0x120   : > { %v1376_v13 = vpop.permute.xlu1 %1375  ;;  %v1573_v27 = vor.u32 %v1572_v59, %v1568_v9  ;;  %v1618_v36 = vshll.u32 %v2756_v58, 16 }
 0x121   : > { %v1368_v22 = vpop.permute.xlu0 %1367  ;;  %v2053_v4 = vsel %vm2027_vm7, %v2020_v25, %v1376_v13  ;;  %v1623_v45 = vshll.u32 %v1533_v19, 16  ;;  %v1822_v25 = vrot.slane %v4004_v43, 1 }
 0x122   : > { %v2045_v61 = vsel %vm2027_vm7, %v2012_v21, %v1368_v22  ;;  %v2813_v22 = vld [vmem:[%s3154_s30 + $0x30] sm:$0xe]  ;;  %v1620_v59 = vrot.slane %v1618_v36, 1 }
 0x123   : > { %v2078_v31 = vsel %vm2060_vm8, %v2045_v61, %v3907_v55  ;;  %v2814_v52 = vor.u32 %v2813_v22, %v2812_v17  ;;  %v1616_v55 = vshrl.u32 %v2756_v58, 16 }
 0x125   : > { %1227 = vrot.lane.b32.xlu2 %v1066_v57, %s3068_s7  ;;  %v2819_v57 = vld [vmem:[%s3154_s30 + $0x60] sm:$0xe]  ;;  %v1821_v14 = vrot.slane %v2814_v52, 1 }
 0x126   : > { %1891 = vrot.lane.b32.xlu1 %v1859_v34, %s3072_s11  ;;  %v1578_v34 = vsel %vm517_vm0, %v1573_v27, %v1577_v7  ;;  %v2820_v28 = vor.u32 %v2819_v57, %v2818_v23  ;;  %v1625_v7 = vrot.slane %v1623_v45, 1 }
 0x127   : > { %v4009_v24 = vpop.permute.xlu2 %1743  ;;  %1883 = vrot.lane.b32.xlu0 %v1847_v6, %s3072_s11  ;;  %v2529_v6 = vld [vmem:[%s3154_s30 + $0xc8] sm:$0x1] }
 0x128   : > { %v1752_v37 = vpop.permute.xlu1 %1751  ;;  %v1014_v9 = vunpack.c.l.b16 %v2529_v6  ;;  %v1833_v48 = vrot.slane %v2820_v28, 1  ;;  %v2806_v6 = vld [vmem:[%s3154_s30 + $0xc0] sm:$0xf0] }
 0x129   : > { %v1488_v39 = vpop.permute.xlu0 %1487  ;;  %v2111_v38 = vsel %vm2093_vm9, %v2078_v31, %v1752_v37  ;;  %v2807_v31 = vld [vmem:[%s3154_s30 + $0xc0] sm:$0xe] }
 0x12a   : > { %v2086_v41 = vsel %vm2060_vm8, %v2053_v4, %v1488_v39  ;;  %v2801_v39 = vld [vmem:[%s3154_s30 + $0x90] sm:$0xe]  ;;  %v4061_v29 = vpack.c.b16 %v1014_v9, %v1014_v9  ;;  %v2808_v9 = vor.u32 %v2807_v31, %v2806_v6  ;;  %v2977_v31 = vld [vmem:[%s3154_s30 + $0xcc] sm:$0xe] }
 0x12b   : > { %v2119_v60 = vsel %vm2093_vm9, %v2086_v41, %v3935_v54  ;;  %v2525_v54 = vld [vmem:[%s3154_s30 + $0x98] sm:$0x1]  ;;  %v2802_v21 = vor.u32 %v2801_v39, %v2800_v12  ;;  %v1726_v12 = vshll.u32 %v4070_v16, 16 }
 0x12c   : > { %v1010_v37 = vunpack.c.l.b16 %v2525_v54  ;;  %v1219_v43 = vshll.u32 %v4061_v29, 16  ;;  %v1348_v39 = vrot.slane %v2808_v9, 1 }
 0x12d   : > { %1363 = vrot.lane.b32.xlu2 %v1323_v3, %s3070_s9  ;;  %v1834_v3 = vrot.slane %v1533_v19, 1  ;;  %v1336_v23 = vrot.slane %v2802_v21, 1 }
 0x12e   : > { %1355 = vrot.lane.b32.xlu1 %v1311_v26, %s3070_s9  ;;  %v1621_v26 = vor.u32 %v1620_v59, %v1616_v55  ;;  %v1221_v17 = vrot.slane %v1219_v43, 1 }
 0x12f   : > { %v4035_v13 = vpop.permute.xlu2 %1241  ;;  %1235 = vrot.lane.b32.xlu0 %v1114_v0, %s3068_s7  ;;  %v1835_v27 = vsel %vm790_vm1, %v1833_v48, %v1834_v3  ;;  %v1823_v0 = vsel %vm790_vm1, %v1821_v14, %v1822_v25  ;;  %v1996_v3 = vsel %vm1994_vm6, %v3711_v53, %v3979_v40  ;;  %v1349_v25 = vrot.slane %v4061_v29, 1 }
 0x130   : > { %v1888_v15 = vpop.permute.xlu1 %1887  ;;  %v1626_v61 = vsel %vm517_vm0, %v1621_v26, %v1625_v7  ;;  %v1222_v52 = vsel %vm517_vm0, %v3960_v20, %v1221_v17  ;;  %v2521_v20 = vld [vmem:[%s3154_s30 + $0x68] sm:$0x1]  ;;  %v1728_v29 = vrot.slane %v1726_v12, 1 }
 0x131   : > { %v2152_v2 = vsel %vm2126_vm10, %v2119_v60, %v1888_v15  ;;  %v1880_v5 = vpop.permute.xlu0 %1879  ;;  %v4077_v15 = vld [vmem:[%s3154_s30 + $0x9c] sm:$0xff]   ;;  %v1006_v21 = vunpack.c.l.b16 %v2521_v20 }
 0x132   : > { %2630 = vmatmul.msk.bf16.vlgmr.msra.gmra.mxu3 %vm2183_vm11, %v2152_v2  ;;  %v2144_v51 = vsel %vm2126_vm10, %v2111_v38, %v1880_v5  ;;  %v2973_v60 = vld [vmem:[%s3154_s30 + $0x9c] sm:$0xf0]  ;;  %v2593_v2 = vld [vmem:[%s3154_s30 + $0xd4] sm:$0x1]  ;;  %v2589_v38 = vld [vmem:[%s3154_s30 + $0xa4] sm:$0x1]  ;;  %v2004_v5 = vsel %vm1994_vm6, %v3867_v1, %v3966_v35 }
 0x133   : > { %2626 = vmatmul.msk.bf16.vlgmr.msra.gmra.mxu2 %vm2183_vm11, %v2144_v51  ;;  %v2974_v51 = vld [vmem:[%s3154_s30 + $0x9c] sm:$0xe]  ;;  %v1526_v55 = vunpack.c.l.b16 %v2593_v2  ;;  %v1522_v48 = vunpack.c.l.b16 %v2589_v38  ;;  %v4130_v6 = vpack.c.b16 %v1006_v21, %v1006_v21  ;;  %v2795_v20 = vld [vmem:[%s3154_s30 + $0x60] sm:$0xe]  ;;  %v2789_v21 = vld [vmem:[%s3154_s30 + $0x30] sm:$0xe] }
 0x135   : > { %1739 = vrot.lane.b32.xlu2 %v1578_v34, %s3071_s10  ;;  %v4109_v14 = vpack.c.b16 %v1526_v55, %v1526_v55  ;;  %v1538_v26 = vpack.c.b16 %v1522_v48, %v1522_v48  ;;  %v4149_v48 = vld [vmem:[%s3154_s30 + $0x3c] sm:$0xf0] }
 0x136   : > { %1475 = vrot.lane.b32.xlu1 %v2756_v58, %s3069_s8  ;;  %v1026_v58 = vpack.c.b16 %v1010_v37, %v1010_v37 }
 0x137   : > { %v4056_v47 = vpop.permute.xlu2 %1377  ;;  %1467 = vrot.lane.b32.xlu0 %v3998_v30, %s3069_s8  ;;  %v4073_v30 = vld [vmem:[%s3154_s30 + $0xcc] sm:$0xf0]  ;;  %v1849_v17 = vrot.slane %v1538_v26, 1 }
 0x138   : > { %v1360_v4 = vpop.permute.xlu1 %1359  ;;  %v1337_v57 = vrot.slane %v1026_v58, 1  ;;  %v1171_v36 = vshll.u32 %v1026_v58, 16  ;;  %v2975_v58 = vor.u32 %v2974_v51, %v2973_v60 }
 0x139   : > { %v1352_v41 = vpop.permute.xlu0 %1351  ;;  %v2037_v59 = vsel %vm2027_vm7, %v2004_v5, %v1360_v4  ;;  %v2517_v4 = vld [vmem:[%s3154_s30 + $0x38] sm:$0x1] }
 0x13a   : > { %v1338_v19 = vsel %vm790_vm1, %v1336_v23, %v1337_v57  ;;  %v1173_v28 = vrot.slane %v1171_v36, 1  ;;  %v2029_v35 = vsel %vm2027_vm7, %v1996_v3, %v1352_v41  ;;  %v1002_v23 = vunpack.c.l.b16 %v2517_v4 }
 0x13b   : > { %v1676_v57 = vshrl.u32 %v4077_v15, 16  ;;  %v1848_v60 = vrot.slane %v2975_v58, 1  ;;  %v2788_v58 = vld [vmem:[%s3154_s30 + $0x30] sm:$0xf0] }
 0x13c   : > { %v1174_v1 = vsel %vm517_vm0, %v3362_v18, %v1173_v28  ;;  %v1678_v18 = vshll.u32 %v4077_v15, 16  ;;  %v4135_v28 = vpack.c.b16 %v1002_v23, %v1002_v23 }
 0x13d   : > { %1875 = vrot.lane.b32.xlu2 %v1835_v27, %s3072_s11  ;;  %v2062_v27 = vsel %vm2060_vm8, %v2029_v35, %v3988_v63  ;;  %v1350_v63 = vsel %vm790_vm1, %v1348_v39, %v1349_v25  ;;  %v2794_v35 = vld [vmem:[%s3154_s30 + $0x60] sm:$0xf0]  ;;  %v4157_v39 = vld [vmem:[%s3154_s30 + $0x6c] sm:$0xff]  }
 0x13e   : > { %1867 = vrot.lane.b32.xlu1 %v1823_v0, %s3072_s11  ;;  %v1680_v36 = vrot.slane %v1678_v18, 1  ;;  %v1075_v55 = vshll.u32 %v4135_v28, 16  ;;  %v2581_v18 = vld [vmem:[%s3154_s30 + $0x44] sm:$0x1]  ;;  %v4418_v25 = vld [vmem:[#allocation6_spill] sm:$0xff] }
 0x13f   : > { %v4081_v34 = vpop.permute.xlu2 %1753  ;;  %1747 = vrot.lane.b32.xlu0 %v1626_v61, %s3071_s10  ;;  %v1731_v61 = vshll.u32 %v4109_v14, 16 }
 0x140   : > { %v1736_v22 = vpop.permute.xlu1 %1735  ;;  %v1681_v38 = vor.u32 %v1680_v36, %v1676_v57  ;;  %v1077_v12 = vrot.slane %v1075_v55, 1  ;;  %v2790_v36 = vor.u32 %v2789_v21, %v2788_v58 }
 0x141   : > { %v1472_v54 = vpop.permute.xlu0 %1471  ;;  %v2095_v41 = vsel %vm2093_vm9, %v2062_v27, %v1736_v22  ;;  %v1683_v22 = vshll.u32 %v1538_v26, 16  ;;  %v2796_v27 = vor.u32 %v2795_v20, %v2794_v35 }
 0x142   : > { %v2070_v45 = vsel %vm2060_vm8, %v2037_v59, %v1472_v54  ;;  %v1850_v54 = vsel %vm790_vm1, %v1848_v60, %v1849_v17  ;;  %v4146_v59 = vld [vmem:[%s3154_s30 + $0x3c] sm:$0xff]  }
 0x143   : > { %v2103_v40 = vsel %vm2093_vm9, %v2070_v45, %v4009_v24  ;;  %v1724_v24 = vshrl.u32 %v4070_v16, 16  ;;  %v1685_v51 = vrot.slane %v1683_v22, 1  ;;  %v1324_v57 = vrot.slane %v2796_v27, 1 }
 0x144   : > { %v1582_v22 = vshll.u32 %v4146_v59, 16 }
 0x145   : > { %1373 = vrot.lane.b32.xlu2 %v1338_v19, %s3070_s9  ;;  %v1729_v2 = vor.u32 %v1728_v29, %v1724_v24  ;;  %v1733_v19 = vrot.slane %v1731_v61, 1  ;;  %v1686_v3 = vsel %vm517_vm0, %v1681_v38, %v1685_v51  ;;  %v4419_v24 = vld [vmem:[#allocation5_spill] sm:$0xff]  ;;  %v1514_v29 = vunpack.c.l.b16 %v2581_v18  ;;  %v2585_v61 = vld [vmem:[%s3154_s30 + $0x74] sm:$0x1] }
 0x146   : > { %1253 = vrot.lane.b32.xlu1 %v1222_v52, %s3068_s7  ;;  %v1518_v60 = vunpack.c.l.b16 %v2585_v61  ;;  %v1312_v38 = vrot.slane %v2790_v36, 1  ;;  %v1584_v55 = vrot.slane %v1582_v22, 1 }
 0x147   : > { %v4106_v37 = vpop.permute.xlu2 %1889  ;;  %1245 = vrot.lane.b32.xlu0 %v1174_v1, %s3068_s7  ;;  %v1734_v9 = vsel %vm517_vm0, %v1729_v2, %v1733_v19  ;;  %v2978_v1 = vor.u32 %v2977_v31, %v4073_v30  ;;  %v1861_v30 = vrot.slane %v4109_v14, 1  ;;  %v1530_v17 = vpack.c.b16 %v1514_v29, %v1514_v29 }
 0x148   : > { %v1872_v53 = vpop.permute.xlu1 %1871  ;;  %v1630_v19 = vshll.u32 %v4157_v39, 16 }
 0x149   : > { %v2136_v7 = vsel %vm2126_vm10, %v2103_v40, %v1872_v53  ;;  %v1864_v0 = vpop.permute.xlu0 %1863  ;;  %v4160_v53 = vld [vmem:[%s3154_s30 + $0x6c] sm:$0xf0]  ;;  %v1860_v4 = vrot.slane %v2978_v1, 1  ;;  %v1825_v61 = vrot.slane %v1530_v17, 1 }
 0x14a   : > { %2622 = vmatmul.msk.bf16.vlgmr.msra.gmra.mxu1 %vm2183_vm11, %v2136_v7  ;;  %v2128_v43 = vsel %vm2126_vm10, %v2095_v41, %v1864_v0  ;;  %v2014_v41 = vsel %vm1994_vm6, %v3793_v10, %v4035_v13  ;;  %v1325_v13 = vrot.slane %v4130_v6, 1  ;;  %v1632_v1 = vrot.slane %v1630_v19, 1 }
 0x14b   : > { %2618 = vmatmul.msk.bf16.vlgmr.msra.gmra.mxu0 %vm2183_vm11, %v2128_v43  ;;  %v1078_v43 = vsel %vm517_vm0, %v4419_v24, %v1077_v12 }
 0x14d   : > { %1493 = vrot.lane.b32.xlu2 %v4070_v16, %s3069_s8 }
 0x14e   : > { %1485 = vrot.lane.b32.xlu1 %v4077_v15, %s3069_s8  ;;  %v1123_v15 = vshll.u32 %v4130_v6, 16  ;;  %v1313_v6 = vrot.slane %v4135_v28, 1  ;;  %v1628_v28 = vshrl.u32 %v4157_v39, 16 }
 0x14f   : > { %1381 = vrot.lane.b32.xlu0 %v1350_v63, %s3070_s9  ;;  %v4138_v5 = vpop.permute.xlu2 %1353  ;;  %v1862_v63 = vsel %vm790_vm1, %v1860_v4, %v1861_v30 }
 0x150   : > { %v1370_v16 = vpop.permute.xlu1 %1369  ;;  %v1125_v45 = vrot.slane %v1123_v15, 1  ;;  %v1326_v15 = vsel %vm790_vm1, %v1324_v57, %v1325_v13  ;;  %v1314_v12 = vsel %vm790_vm1, %v1312_v38, %v1313_v6  ;;  %v1633_v18 = vor.u32 %v1632_v1, %v1628_v28 }
 0x151   : > { %v1250_v52 = vpop.permute.xlu0 %1249  ;;  %v2047_v23 = vsel %vm2027_vm7, %v2014_v41, %v1370_v16 }
 0x152   : > { %v1126_v26 = vsel %vm517_vm0, %v4418_v25, %v1125_v45  ;;  %v2022_v10 = vsel %vm1994_vm6, %v3954_v46, %v1250_v52  ;;  %v2980_v45 = vld [vmem:[%s3154_s30 + $0x6c] sm:$0xe] }
 0x153   : > { %v2055_v46 = vsel %vm2027_vm7, %v2022_v10, %v4056_v47  ;;  %v1587_v47 = vshll.u32 %v1530_v17, 16 }
 0x155   : > { %1885 = vrot.lane.b32.xlu2 %v1850_v54, %s3072_s11 }
 0x156   : > { %1765 = vrot.lane.b32.xlu1 %v1734_v9, %s3071_s10  ;;  %v1580_v9 = vshrl.u32 %v4146_v59, 16 }
 0x157   : > { %1757 = vrot.lane.b32.xlu0 %v1686_v3, %s3071_s10  ;;  %v4172_v0 = vpop.permute.xlu2 %1473 }
 0x158   : > { %v1490_v40 = vpop.permute.xlu1 %1489 }
 0x159   : > { %v1482_v7 = vpop.permute.xlu0 %1481  ;;  %v2088_v54 = vsel %vm2060_vm8, %v2055_v46, %v1490_v40  ;;  %v2983_v40 = vld [vmem:[%s3154_s30 + $0x3c] sm:$0xe] }
 0x15a   : > { %v2080_v14 = vsel %vm2060_vm8, %v2047_v23, %v1482_v7  ;;  %v2981_v7 = vor.u32 %v2980_v45, %v4160_v53  ;;  %v2984_v58 = vor.u32 %v2983_v40, %v4149_v48 }
 0x15b   : > { %v2113_v2 = vsel %vm2093_vm9, %v2080_v14, %v4081_v34  ;;  %v1534_v34 = vpack.c.b16 %v1518_v60, %v1518_v60 }
 0x15c   : > { %v1836_v41 = vrot.slane %v2981_v7, 1  ;;  %v1824_v29 = vrot.slane %v2984_v58, 1 }
 0x15d   : > { %1237 = vrot.lane.b32.xlu2 %v1126_v26, %s3068_s7  ;;  %v1635_v35 = vshll.u32 %v1534_v34, 16  ;;  %v1585_v26 = vor.u32 %v1584_v55, %v1580_v9  ;;  %v1837_v24 = vrot.slane %v1534_v34, 1 }
 0x15e   : > { %1229 = vrot.lane.b32.xlu1 %v1078_v43, %s3068_s7  ;;  %v1826_v53 = vsel %vm790_vm1, %v1824_v29, %v1825_v61  ;;  %s2641_s7 = sshll.u32 %s3055_s15, 8  ;;  %s2374_s15 = scalar_lea.sflag [#allocation3], %s175_s28 }
 0x15f   : > { %1893 = vrot.lane.b32.xlu0 %v1862_v63, %s3072_s11  ;;  %v1866_v20 = vpop.permute.xlu2 %1865  ;;  %v1637_v25 = vrot.slane %v1635_v35, 1  ;;  %v1838_v14 = vsel %vm790_vm1, %v1836_v41, %v1837_v24 }
 0x160   : > { %v1882_v31 = vpop.permute.xlu1 %1881 }
 0x161   : > { %v2146_v16 = vsel %vm2126_vm10, %v2113_v2, %v1882_v31  ;;  %v1762_v51 = vpop.permute.xlu0 %1761 }
 0x162   : > { %2627 = vmatmul.msk.bf16.gmra.mxu2 %vm2183_vm11, %v2146_v16  ;;  %v2121_v52 = vsel %vm2093_vm9, %v2088_v54, %v1762_v51 }
 0x163   : > { %v2154_v3 = vsel %vm2126_vm10, %v2121_v52, %v4106_v37  ;;  %v1589_v37 = vrot.slane %v1587_v47, 1 }
 0x164   : > { %2631 = vmatmul.msk.bf16.gmra.mxu3 %vm2183_vm11, %v2154_v3 }
 0x165   : > { %1469 = vrot.lane.b32.xlu2 %v4146_v59, %s3069_s8  ;;  %v1638_v59 = vsel %vm517_vm0, %v1633_v18, %v1637_v25  ;;  %v1590_v27 = vsel %vm517_vm0, %v1585_v26, %v1589_v37 }
 0x166   : > { %1365 = vrot.lane.b32.xlu1 %v1326_v15, %s3070_s9 }
 0x167   : > { %1357 = vrot.lane.b32.xlu0 %v1314_v12, %s3070_s9  ;;  %v1252_v21 = vpop.permute.xlu2 %1251 }
 0x168   : > { %v1234_v4 = vpop.permute.xlu1 %1233  ;;  %v2024_v51 = vsel %vm1994_vm6, %v3948_v44, %v1252_v21  ;;  %v4267_v21 = vld [vmem:[%s4410_s2] ss:$0 sm:$0xff] }
 0x169   : > { %v1226_v30 = vpop.permute.xlu0 %1225  ;;  %v2006_v17 = vsel %vm1994_vm6, %v3861_v32, %v1234_v4 }
 0x16a   : > { %v1998_v63 = vsel %vm1994_vm6, %v3841_v8, %v1226_v30 }
 0x16d   : > { %1749 = vrot.lane.b32.xlu2 %v1638_v59, %s3071_s10 }
 0x16e   : > { %1741 = vrot.lane.b32.xlu1 %v1590_v27, %s3071_s10  ;;  %s2388_s10 = scalar_lea.hbm %s4411_s3, %s2641_s7 }
 0x16f   : > { %1477 = vrot.lane.b32.xlu0 %v4157_v39, %s3069_s8  ;;  %v1484_v57 = vpop.permute.xlu2 %1483  ;;  %v2031_v39 = vsel %vm2027_vm7, %v1998_v63, %v4138_v5  ;;  %s2391_s18 = sshll.u32 %s2388_s10, 4  ;;  %s2392_s18 = int_to_ptr.hbm [resolvable:$true] %s2391_s18 }
 0x170   : > { %v1466_v43 = vpop.permute.xlu1 %1465  ;;  %s2999_s19 = sshra.s32 %s2392_s18, 4  ;;  %s3000_s19 = int_to_ptr.hbm [resolvable:$true] %s2999_s19 }
 0x171   : > { %v1362_v23 = vpop.permute.xlu0 %1361  ;;  %v2064_v36 = vsel %vm2060_vm8, %v2031_v39, %v1466_v43  ;;  %s3001_s21 = scalar_lea.hbm %s3000_s19, 256  ;;  %p3006_p1 = scmp.lt.s32.totalorder %s3000_s19, %s4411_s3 }
 0x172   : > { %v2039_v8 = vsel %vm2027_vm7, %v2006_v17, %v1362_v23  ;;  %p3002_p12 = scmp.ne.s32.totalorder %s3000_s19, %s3001_s21  ;;  %p3007_p2 = scmp.lt.s32.totalorder %s3005_s27, %s3001_s21 }
 0x173   : > { %v2072_v31 = vsel %vm2060_vm8, %v2039_v8, %v4172_v0 }
 0x174   : > { %p3003_p13 = pnand %p3002_p12, %p3134_p4  ;;  %p3008_p3 = por %p3007_p2, %p3006_p1 }
 0x176   : > { %1877 = vrot.lane.b32.xlu1 %v1838_v14, %s3072_s11  ;;  %p3004_p0 = pneg %p3003_p13 }
 0x177   : > { %1869 = vrot.lane.b32.xlu0 %v1826_v53, %s3072_s11  ;;  %v1764_v19 = vpop.permute.xlu2 %1763  ;;  %s2389_s11 = sshll.u32 %s4276_s6, 4  ;;  %s2390_s11 = int_to_ptr.vmem [resolvable:$true] %s2389_s11 }
 0x178   : > { %v1746_v48 = vpop.permute.xlu1 %1745  ;;  %p3009_p5 = pnand %p3008_p3, %p3004_p0 }
 0x179   : > { %v1738_v10 = vpop.permute.xlu0 %1737  ;;  %v2105_v5 = vsel %vm2093_vm9, %v2072_v31, %v1746_v48 }
 0x17a   : > { %v2097_v13 = vsel %vm2093_vm9, %v2064_v36, %v1738_v10 }
 0x17b   : > { %v2130_v60 = vsel %vm2126_vm10, %v2097_v13, %v1866_v20 }
 0x17c   : > { %2619 = vmatmul.msk.bf16.gmra.mxu0 %vm2183_vm11, %v2130_v60 }
 0x17f   : > { %v1228_v6 = vpop.permute.xlu2 %1227 }
 0x180   : > { %v1244_v22 = vpop.permute.xlu1 %1243  ;;  %v2000_v18 = vsel %vm1994_vm6, %v3832_v56, %v1228_v6 }
 0x181   : > { %v1874_v2 = vpop.permute.xlu0 %1873  ;;  %v2016_v0 = vsel %vm1994_vm6, %v3920_v49, %v1244_v22 }
 0x182   : > { %v2138_v46 = vsel %vm2126_vm10, %v2105_v5, %v1874_v2 }
 0x183   : > { %2623 = vmatmul.msk.bf16.gmra.mxu1 %vm2183_vm11, %v2138_v46 }
 0x187   : > { %v1364_v9 = vpop.permute.xlu2 %1363 }
 0x188   : > { %v1380_v16 = vpop.permute.xlu1 %1379 }
 0x189   : > { %v1372_v38 = vpop.permute.xlu0 %1371  ;;  %v2057_v15 = vsel %vm2027_vm7, %v2024_v51, %v1380_v16 }
 0x18a   : > { %v2049_v52 = vsel %vm2027_vm7, %v2016_v0, %v1372_v38 }
 0x18b   : > { %v2082_v3 = vsel %vm2060_vm8, %v2049_v52, %v1484_v57 }
 0x18f   : > { %v1740_v35 = vpop.permute.xlu2 %1739 }
 0x190   : > { %v1756_v32 = vpop.permute.xlu1 %1755 }
 0x191   : > { %v1492_v54 = vpop.permute.xlu0 %1491  ;;  %v2115_v28 = vsel %vm2093_vm9, %v2082_v3, %v1756_v32 }
 0x192   : > { %v2090_v34 = vsel %vm2060_vm8, %v2057_v15, %v1492_v54 }
 0x193   : > { %v2123_v47 = vsel %vm2093_vm9, %v2090_v34, %v1764_v19 }
 0x197   : > { %v1876_v25 = vpop.permute.xlu2 %1875 }
 0x198   : > { %v1892_v55 = vpop.permute.xlu1 %1891 }
 0x199   : > { %v2156_v45 = vsel %vm2126_vm10, %v2123_v47, %v1892_v55  ;;  %v1884_v44 = vpop.permute.xlu0 %1883 }
 0x19a   : > { %2632 = vmatmul.msk.bf16.gmra.mxu3 %vm2183_vm11, %v2156_v45  ;;  %v2148_v1 = vsel %vm2126_vm10, %v2115_v28, %v1884_v44 }
 0x19b   : > { %2628 = vmatmul.msk.bf16.gmra.mxu2 %vm2183_vm11, %v2148_v1 }
 0x19f   : > { %v1374_v24 = vpop.permute.xlu2 %1373 }
 0x1a0   : > { %v1356_v49 = vpop.permute.xlu1 %1355 }
 0x1a1   : > { %v1236_v20 = vpop.permute.xlu0 %1235  ;;  %v2033_v26 = vsel %vm2027_vm7, %v2000_v18, %v1356_v49 }
 0x1a2   : > { %v2008_v4 = vsel %vm1994_vm6, %v3766_v62, %v1236_v20 }
 0x1a3   : > { %v2041_v27 = vsel %vm2027_vm7, %v2008_v4, %v1364_v9 }
 0x1a7   : > { %v1494_v36 = vpop.permute.xlu2 %1493 }
 0x1a8   : > { %v1476_v12 = vpop.permute.xlu1 %1475 }
 0x1a9   : > { %v1468_v40 = vpop.permute.xlu0 %1467  ;;  %v2074_v58 = vsel %vm2060_vm8, %v2041_v27, %v1476_v12 }
 0x1aa   : > { %v2066_v37 = vsel %vm2060_vm8, %v2033_v26, %v1468_v40 }
 0x1ab   : > { %v2099_v30 = vsel %vm2093_vm9, %v2066_v37, %v1740_v35 }
 0x1af   : > { %v1886_v46 = vpop.permute.xlu2 %1885 }
 0x1b0   : > { %v1868_v59 = vpop.permute.xlu1 %1867 }
 0x1b1   : > { %v2132_v7 = vsel %vm2126_vm10, %v2099_v30, %v1868_v59  ;;  %v1748_v56 = vpop.permute.xlu0 %1747 }
 0x1b2   : > { %2620 = vmatmul.msk.bf16.gmra.mxu0 %vm2183_vm11, %v2132_v7  ;;  %v2107_v62 = vsel %vm2093_vm9, %v2074_v58, %v1748_v56 }
 0x1b3   : > { %v2140_v41 = vsel %vm2126_vm10, %v2107_v62, %v1876_v25 }
 0x1b4   : > { %2624 = vmatmul.msk.bf16.gmra.mxu1 %vm2183_vm11, %v2140_v41 }
 0x1b5   : > { %v2289_v43 = vpop.f32.mrf.mxu3 }
 0x1b6   : > { %v2290_v29 = vadd.f32 %v4267_v21, %v2289_v43  ;;  %v2269_v61 = vpop.f32.mrf.mxu2 }
 0x1b7   : > { %v2270_v23 = vadd.f32 %v4267_v21, %v2269_v61  ;;  %v1238_v49 = vpop.permute.xlu2 %1237 }
 0x1b8   : > { %v2333_v14 = vmax.f32 %v2290_v29, 0.0  ;;  %v1254_v53 = vpop.permute.xlu1 %1253  ;;  %v2010_v37 = vsel %vm1994_vm6, %v3894_v11, %v1238_v49 }
 0x1b9   : > { %v2325_v63 = vmax.f32 %v2270_v23, 0.0  ;;  %v1246_v48 = vpop.permute.xlu0 %1245  ;;  %v2026_v34 = vsel %vm1994_vm6, %v3851_v42, %v1254_v53 }
 0x1ba   : > { %2365 = vst [vmem:[%s4276_s6 + $0xc0] sm:$0xff] %v2333_v14  ;;  %v2018_v31 = vsel %vm1994_vm6, %v3915_v50, %v1246_v48 }
 0x1bb   : > { %2357 = vst [vmem:[%s4276_s6 + $0x80] sm:$0xff] %v2325_v63  ;;  %v2051_v16 = vsel %vm2027_vm7, %v2018_v31, %v1374_v24 }
 0x1bd   : > { %v2291_v57 = vpop.f32.mrf.mxu3 }
 0x1be   : > { %v2292_v39 = vadd.f32 %v4267_v21, %v2291_v57  ;;  %v2271_v10 = vpop.f32.mrf.mxu2 }
 0x1bf   : > { %v2272_v13 = vadd.f32 %v4267_v21, %v2271_v10  ;;  %v1470_v18 = vpop.permute.xlu2 %1469 }
 0x1c0   : > { %v2334_v60 = vmax.f32 %v2292_v39, 0.0  ;;  %v1486_v17 = vpop.permute.xlu1 %1485 }
 0x1c1   : > { %v2326_v8 = vmax.f32 %v2272_v13, 0.0  ;;  %v1382_v22 = vpop.permute.xlu0 %1381  ;;  %v2084_v6 = vsel %vm2060_vm8, %v2051_v16, %v1486_v17 }
 0x1c2   : > { %2366 = vst [vmem:[%s4276_s6 + $0xc8] sm:$0xff] %v2334_v60  ;;  %v2059_v52 = vsel %vm2027_vm7, %v2026_v34, %v1382_v22 }
 0x1c3   : > { %2358 = vst [vmem:[%s4276_s6 + $0x88] sm:$0xff] %v2326_v8  ;;  %v2092_v3 = vsel %vm2060_vm8, %v2059_v52, %v1494_v36 }
 0x1c7   : > { %v2249_v5 = vpop.f32.mrf.mxu1  ;;  %v1750_v27 = vpop.permute.xlu2 %1749 }
 0x1c8   : > { %v2250_v2 = vadd.f32 %v4267_v21, %v2249_v5  ;;  %v1766_v19 = vpop.permute.xlu1 %1765  ;;  %v2229_v38 = vpop.f32.mrf.mxu0 }
 0x1c9   : > { %v2230_v32 = vadd.f32 %v4267_v21, %v2229_v38  ;;  %v1758_v51 = vpop.permute.xlu0 %1757  ;;  %v2125_v28 = vsel %vm2093_vm9, %v2092_v3, %v1766_v19 }
 0x1ca   : > { %v2317_v54 = vmax.f32 %v2250_v2, 0.0  ;;  %v2117_v15 = vsel %vm2093_vm9, %v2084_v6, %v1758_v51 }
 0x1cb   : > { %v2309_v0 = vmax.f32 %v2230_v32, 0.0  ;;  %v2150_v50 = vsel %vm2126_vm10, %v2117_v15, %v1886_v46 }
 0x1cc   : > { %2349 = vst [vmem:[%s4276_s6 + $0x40] sm:$0xff] %v2317_v54  ;;  %2629 = vmatmul.msk.bf16.gmra.mxu2 %vm2183_vm11, %v2150_v50 }
 0x1cd   : > { %2341 = vst [vmem:[%s4276_s6] sm:$0xff] %v2309_v0 }
 0x1cf   : > { %v2251_v9 = vpop.f32.mrf.mxu1 }
 0x1d0   : > { %v2252_v55 = vadd.f32 %v4267_v21, %v2251_v9  ;;  %v1230_v47 = vpop.permute.xlu1 %1229  ;;  %v2231_v45 = vpop.f32.mrf.mxu0 }
 0x1d1   : > { %v2232_v44 = vadd.f32 %v4267_v21, %v2231_v45  ;;  %v1894_v42 = vpop.permute.xlu0 %1893  ;;  %v2002_v59 = vsel %vm1994_vm6, %v3743_v33, %v1230_v47 }
 0x1d2   : > { %v2318_v1 = vmax.f32 %v2252_v55, 0.0  ;;  %v2158_v35 = vsel %vm2126_vm10, %v2125_v28, %v1894_v42 }
 0x1d3   : > { %v2310_v20 = vmax.f32 %v2232_v44, 0.0  ;;  %2633 = vmatmul.msk.bf16.gmra.mxu3 %vm2183_vm11, %v2158_v35 }
 0x1d4   : > { %2350 = vst [vmem:[%s4276_s6 + $0x48] sm:$0xff] %v2318_v1 }
 0x1d5   : > { %2342 = vst [vmem:[%s4276_s6 + $0x8] sm:$0xff] %v2310_v20 }
 0x1d8   : > { %v1366_v12 = vpop.permute.xlu1 %1365 }
 0x1d9   : > { %v1358_v40 = vpop.permute.xlu0 %1357  ;;  %v2043_v4 = vsel %vm2027_vm7, %v2010_v37, %v1366_v12 }
 0x1da   : > { %v2035_v58 = vsel %vm2027_vm7, %v2002_v59, %v1358_v40 }
 0x1db   : > { %v2068_v43 = vsel %vm2060_vm8, %v2035_v58, %v1470_v18 }
 0x1e0   : > { %v1742_v25 = vpop.permute.xlu1 %1741 }
 0x1e1   : > { %v1478_v26 = vpop.permute.xlu0 %1477  ;;  %v2101_v61 = vsel %vm2093_vm9, %v2068_v43, %v1742_v25 }
 0x1e2   : > { %v2076_v30 = vsel %vm2060_vm8, %v2043_v4, %v1478_v26 }
 0x1e3   : > { %v2109_v62 = vsel %vm2093_vm9, %v2076_v30, %v1750_v27 }
 0x1e5   : > { %v2274_v7 = vpop.f32.mrf.mxu2 }
 0x1e6   : > { %v2275_v56 = vadd.f32 %v4267_v21, %v2274_v7 }
 0x1e7   : > { %v2294_v24 = vpop.f32.mrf.mxu3 }
 0x1e8   : > { %v2327_v41 = vmax.f32 %v2275_v56, 0.0  ;;  %v1878_v11 = vpop.permute.xlu1 %1877  ;;  %v2295_v29 = vadd.f32 %v4267_v21, %v2294_v24 }
 0x1e9   : > { %v2142_v33 = vsel %vm2126_vm10, %v2109_v62, %v1878_v11  ;;  %v1870_v23 = vpop.permute.xlu0 %1869 }
 0x1ea   : > { %2359 = vst [vmem:[%s4276_s6 + $0x90] sm:$0xff] %v2327_v41  ;;  %2625 = vmatmul.msk.bf16.gmra.mxu1 %vm2183_vm11, %v2142_v33  ;;  %v2335_v14 = vmax.f32 %v2295_v29, 0.0  ;;  %v2134_v53 = vsel %vm2126_vm10, %v2101_v61, %v1870_v23 }
 0x1eb   : > { %2621 = vmatmul.msk.bf16.gmra.mxu0 %vm2183_vm11, %v2134_v53 }
 0x1ec   : > { %2367 = vst [vmem:[%s4276_s6 + $0xd0] sm:$0xff] %v2335_v14 }
 0x1ed   : > { %v2276_v63 = vpop.f32.mrf.mxu2 }
 0x1ee   : > { %v2277_v48 = vadd.f32 %v4267_v21, %v2276_v63 }
 0x1ef   : > { %v2296_v39 = vpop.f32.mrf.mxu3 }
 0x1f0   : > { %v2328_v57 = vmax.f32 %v2277_v48, 0.0  ;;  %v2297_v36 = vadd.f32 %v4267_v21, %v2296_v39 }
 0x1f2   : > { %2360 = vst [vmem:[%s4276_s6 + $0x98] sm:$0xff] %v2328_v57  ;;  %v2336_v10 = vmax.f32 %v2297_v36, 0.0 }
 0x1f4   : > { %2368 = vst [vmem:[%s4276_s6 + $0xd8] sm:$0xff] %v2336_v10 }
 0x1f9   : > { %v2234_v13 = vpop.f32.mrf.mxu0 }
 0x1fa   : > { %v2235_v60 = vadd.f32 %v4267_v21, %v2234_v13 }
 0x1fc   : > { %v2311_v17 = vmax.f32 %v2235_v60, 0.0 }
 0x1fe   : > { %2343 = vst [vmem:[%s4276_s6 + $0x10] sm:$0xff] %v2311_v17 }
 0x200   : > { %v2254_v8 = vpop.f32.mrf.mxu1 }
 0x201   : > { %v2255_v22 = vadd.f32 %v4267_v21, %v2254_v8  ;;  %v2236_v31 = vpop.f32.mrf.mxu0 }
 0x202   : > { %v2237_v5 = vadd.f32 %v4267_v21, %v2236_v31 }
 0x203   : > { %v2319_v2 = vmax.f32 %v2255_v22, 0.0 }
 0x204   : > { %v2312_v19 = vmax.f32 %v2237_v5, 0.0 }
 0x205   : > { %2351 = vst [vmem:[%s4276_s6 + $0x50] sm:$0xff] %v2319_v2 }
 0x206   : > { %2344 = vst [vmem:[%s4276_s6 + $0x18] sm:$0xff] %v2312_v19 }
 0x208   : > { %v2256_v46 = vpop.f32.mrf.mxu1 }
 0x209   : > { %v2257_v16 = vadd.f32 %v4267_v21, %v2256_v46 }
 0x20b   : > { %v2320_v38 = vmax.f32 %v2257_v16, 0.0 }
 0x20d   : > { %2352 = vst [vmem:[%s4276_s6 + $0x58] sm:$0xff] %v2320_v38 }
 0x21d   : > { %v2299_v6 = vpop.f32.mrf.mxu3 }
 0x21e   : > { %v2300_v32 = vadd.f32 %v4267_v21, %v2299_v6  ;;  %v2279_v54 = vpop.f32.mrf.mxu2 }
 0x21f   : > { %v2280_v51 = vadd.f32 %v4267_v21, %v2279_v54 }
 0x220   : > { %v2337_v15 = vmax.f32 %v2300_v32, 0.0 }
 0x221   : > { %v2329_v0 = vmax.f32 %v2280_v51, 0.0 }
 0x222   : > { %2369 = vst [vmem:[%s4276_s6 + $0xe0] sm:$0xff] %v2337_v15 }
 0x223   : > { %2361 = vst [vmem:[%s4276_s6 + $0xa0] sm:$0xff] %v2329_v0 }
 0x225   : > { %v2301_v50 = vpop.f32.mrf.mxu3 }
 0x226   : > { %v2302_v34 = vadd.f32 %v4267_v21, %v2301_v50  ;;  %v2281_v52 = vpop.f32.mrf.mxu2 }
 0x227   : > { %v2282_v9 = vadd.f32 %v4267_v21, %v2281_v52 }
 0x228   : > { %v2338_v55 = vmax.f32 %v2302_v34, 0.0 }
 0x229   : > { %v2330_v47 = vmax.f32 %v2282_v9, 0.0 }
 0x22a   : > { %2370 = vst [vmem:[%s4276_s6 + $0xe8] sm:$0xff] %v2338_v55 }
 0x22b   : > { %2362 = vst [vmem:[%s4276_s6 + $0xa8] sm:$0xff] %v2330_v47 }
 0x22f   : > { %v2239_v3 = vpop.f32.mrf.mxu0 }
 0x230   : > { %v2240_v45 = vadd.f32 %v4267_v21, %v2239_v3 }
 0x231   : > { %v2259_v44 = vpop.f32.mrf.mxu1 }
 0x232   : > { %v2313_v28 = vmax.f32 %v2240_v45, 0.0  ;;  %v2260_v1 = vadd.f32 %v4267_v21, %v2259_v44 }
 0x234   : > { %2345 = vst [vmem:[%s4276_s6 + $0x20] sm:$0xff] %v2313_v28  ;;  %v2321_v42 = vmax.f32 %v2260_v1, 0.0 }
 0x236   : > { %2353 = vst [vmem:[%s4276_s6 + $0x60] sm:$0xff] %v2321_v42 }
 0x237   : > { %v2241_v49 = vpop.f32.mrf.mxu0 }
 0x238   : > { %v2242_v35 = vadd.f32 %v4267_v21, %v2241_v49 }
 0x239   : > { %v2261_v12 = vpop.f32.mrf.mxu1 }
 0x23a   : > { %v2314_v20 = vmax.f32 %v2242_v35, 0.0  ;;  %v2262_v40 = vadd.f32 %v4267_v21, %v2261_v12 }
 0x23c   : > { %2346 = vst [vmem:[%s4276_s6 + $0x28] sm:$0xff] %v2314_v20  ;;  %v2322_v18 = vmax.f32 %v2262_v40, 0.0 }
 0x23e   : > { %2354 = vst [vmem:[%s4276_s6 + $0x68] sm:$0xff] %v2322_v18 }
 0x24f   : > { %v2284_v25 = vpop.f32.mrf.mxu2 }
 0x250   : > { %v2285_v26 = vadd.f32 %v4267_v21, %v2284_v25 }
 0x252   : > { %v2331_v37 = vmax.f32 %v2285_v26, 0.0 }
 0x254   : > { %2363 = vst [vmem:[%s4276_s6 + $0xb0] sm:$0xff] %v2331_v37 }
 0x256   : > { %v2304_v4 = vpop.f32.mrf.mxu3 }
 0x257   : > { %v2305_v59 = vadd.f32 %v4267_v21, %v2304_v4  ;;  %v2286_v30 = vpop.f32.mrf.mxu2 }
 0x258   : > { %v2287_v27 = vadd.f32 %v4267_v21, %v2286_v30 }
 0x259   : > { %v2339_v7 = vmax.f32 %v2305_v59, 0.0 }
 0x25a   : > { %v2332_v58 = vmax.f32 %v2287_v27, 0.0 }
 0x25b   : > { %2371 = vst [vmem:[%s4276_s6 + $0xf0] sm:$0xff] %v2339_v7 }
 0x25c   : > { %2364 = vst [vmem:[%s4276_s6 + $0xb8] sm:$0xff] %v2332_v58 }
 0x25e   : > { %v2306_v56 = vpop.f32.mrf.mxu3 }
 0x25f   : > { %v2307_v62 = vadd.f32 %v4267_v21, %v2306_v56 }
 0x261   : > { %v2340_v41 = vmax.f32 %v2307_v62, 0.0 }
 0x263   : > { %2372 = vst [vmem:[%s4276_s6 + $0xf8] sm:$0xff] %v2340_v41 }
 0x267   : > { %v2264_v24 = vpop.f32.mrf.mxu1 }
 0x268   : > { %v2265_v11 = vadd.f32 %v4267_v21, %v2264_v24  ;;  %v2244_v43 = vpop.f32.mrf.mxu0 }
 0x269   : > { %v2245_v29 = vadd.f32 %v4267_v21, %v2244_v43 }
 0x26a   : > { %v2323_v33 = vmax.f32 %v2265_v11, 0.0 }
 0x26b   : > { %v2315_v61 = vmax.f32 %v2245_v29, 0.0 }
 0x26c   : > { %2355 = vst [vmem:[%s4276_s6 + $0x70] sm:$0xff] %v2323_v33 }
 0x26d   : > { %2347 = vst [vmem:[%s4276_s6 + $0x30] sm:$0xff] %v2315_v61 }
 0x26f   : > { %v2266_v23 = vpop.f32.mrf.mxu1 }
 0x270   : > { %v2267_v14 = vadd.f32 %v4267_v21, %v2266_v23  ;;  %v2246_v53 = vpop.f32.mrf.mxu0 }
 0x271   : > { %v2247_v63 = vadd.f32 %v4267_v21, %v2246_v53 }
 0x272   : > { %v2324_v48 = vmax.f32 %v2267_v14, 0.0 }
 0x273   : > { %v2316_v57 = vmax.f32 %v2247_v63, 0.0 }
 0x274   : > { %2356 = vst [vmem:[%s4276_s6 + $0x78] sm:$0xff] %v2324_v48 }
 0x275   : > { %2348 = vst [vmem:[%s4276_s6 + $0x38] sm:$0xff] %v2316_v57 }
 0x276   : > { %3012 = shalt.err (!%p3009_p5)
}
 0x277   : > { %s3073_s28 = smov 128  }
 0x278   : > { %2843 = dma.vmem_to_hbm [thread:$0]  (%p3134_p4), %s2390_s11, 4096, %s2392_s18, %s2374_s15, %s3073_s28, %s3073_s28, %s3066_s5  }
 0x279 PF: > { %p2849_p6 = scmp.ge.s32.totalorder %s3063_s17, 2  ;;  %s2406_s4 = sand.u32 1, %s3043_s12  }
 0x27a   : > { %s2407_s6 = scalar_lea.sflag [#allocation3], %s2406_s4 }
 0x27b   : > { %p2846_p7 = pnand %p2849_p6, %p3141_p8 }
 0x27d   : > { %p2847_p9 = pneg %p2846_p7 }
 0x27f   : > { %3038 = dma.done.wait (%p2847_p9), %s2407_s6, 4096  }
 0x280   : > { %3040 = vsyncadd (%p2847_p9), %s2407_s6, 4294963200  ;;  %s16_s17 = sadd.s32 1, %s3063_s17   ;;  %s4420_s12 = smov %s3047_s13 }
 0x281   : > { %p13_p10 = scmp.ge.s32.totalorder %s16_s17, 4   ;;  %s4421_s13 = smov %s3051_s14 }
 0x282   : > { %s4422_s14 = smov %s3147_s25  ;;  %s4423_s15 = smov %s3059_s16 }
 0x283   : > { %s4424_s16 = smov %s4426_s20  ;;  %15 = sbr.rel (!%p13_p10) target bundleno = 4 (0x4), region = 70 }
 0x288   :  { %2413 = vsyncpa [#allocation3], 1 }
 0x289   :  { %2415 = vsyncpa [#allocation3 + $0x1], 1 }

</bundles_post_ra>
